<compile_context>
chip_gen: v7x
topology: tpu7x:2x2x1
jax: 0.10.0
libtpu: 0.0.40
codegen_flags: <defaults>
</compile_context>

<pallas_src>
import functools
import math

import jax
import jax.numpy as jnp
from jax import lax
from jax.experimental import pallas as pl
from jax.experimental.pallas import tpu as pltpu


# ------------------------------ fused kernel --------------------------------

def _layer_norm(x, g, b, eps=1e-12):
    mu = jnp.mean(x, axis=-1, keepdims=True)
    var = jnp.mean((x - mu) ** 2, axis=-1, keepdims=True)
    return (x - mu) * lax.rsqrt(var + eps) * g + b


def _bert_layer_kernel(emb_ref, mask_ref, eg_ref, eb_ref,
                       wqkv_ref, bqkv_ref, wo_ref, bo_ref, g1_ref, be1_ref,
                       w1_ref, b1_ref, w2_ref, b2_ref, g2_ref, be2_ref,
                       out_ref, x_ref, ctx_ref, *, S, H, nh, dh, L):
    f32 = jnp.float32
    bf16 = jnp.bfloat16
    l = pl.program_id(1)

    # Layer 0: build the residual stream from the embedding block; it stays in
    # the persistent VMEM scratch x_ref across the layer grid axis.
    @pl.when(l == 0)
    def _():
        x_ref[...] = _layer_norm(emb_ref[0], eg_ref[...], eb_ref[...])

    x = x_ref[...]                                           # (S, H) f32

    # Additive attention mask built in-kernel from the (1, S) mask row.
    add_mask = (1.0 - mask_ref[0]) * -1e9                    # (1, S)

    # ---- fused QKV projection (bf16 operands, f32 accumulation) ----
    qkv = jnp.dot(x.astype(bf16), wqkv_ref[0],
                  preferred_element_type=f32) + bqkv_ref[0]  # (S, 3H) f32
    scale = 1.0 / math.sqrt(dh)
    q = (qkv[:, 0 * H:1 * H] * scale).astype(bf16)           # scale folded once
    k = qkv[:, 1 * H:2 * H].astype(bf16)
    v = qkv[:, 2 * H:3 * H].astype(bf16)

    # ---- multi-head attention: per-head compute, scratch writeback (no
    #      concatenate); static unroll over nh with static column slices.
    # TODO(synk): for BERT-base (dh=64) pre-permute Wqkv so head pairs share a
    # 128-lane-aligned block and run two heads per MXU call.
    for h in range(nh):
        c0 = h * dh
        qh = q[:, c0:c0 + dh]
        kh = k[:, c0:c0 + dh]
        vh = v[:, c0:c0 + dh]
        s = lax.dot_general(qh, kh, (((1,), (1,)), ((), ())),
                            preferred_element_type=f32)       # (S, S) f32
        s = s + add_mask
        m = jnp.max(s, axis=-1, keepdims=True)
        p = jnp.exp(s - m)
        p = p * pl.reciprocal(jnp.sum(p, axis=-1, keepdims=True), approx=True)
        ctx_ref[:, c0:c0 + dh] = jnp.dot(p.astype(bf16), vh,
                                         preferred_element_type=f32)

    # ---- output projection + residual + LN ----
    attn_out = jnp.dot(ctx_ref[...].astype(bf16), wo_ref[0],
                       preferred_element_type=f32) + bo_ref[0]
    x = _layer_norm(x + attn_out, g1_ref[0], be1_ref[0])

    # ---- FFN + residual + LN (per-sequence rows => f32 intermediates small;
    #      TODO(synk): add row-tiling of h1 for very long sequences on v7x) ----
    h1 = jnp.dot(x.astype(bf16), w1_ref[0],
                 preferred_element_type=f32) + b1_ref[0]
    # TODO(synk): HF BERT default is exact erf GELU; tanh approximation used.
    h1 = 0.5 * h1 * (1.0 + jnp.tanh(0.7978845608028654 *
                                    (h1 + 0.044715 * h1 * h1 * h1)))
    ffn_out = jnp.dot(h1.astype(bf16), w2_ref[0],
                      preferred_element_type=f32) + b2_ref[0]
    x = _layer_norm(x + ffn_out, g2_ref[0], be2_ref[0])
    x_ref[...] = x

    # ---- last layer: mean pool over sequence (AdaptiveAvgPool1d(1)),
    #      single lane-dense (1, H) store ----
    @pl.when(l == L - 1)
    def _():
        out_ref[0] = jnp.mean(x, axis=0, keepdims=True).astype(out_ref.dtype)


# --------------------------- parameter init (synthetic) ---------------------

def init_params(key, cfg):
    H, F, L = cfg["hidden"], cfg["ffn"], cfg["layers"]

    def norm(k, shape, scale=0.02, dtype=jnp.float32):
        return (scale * jax.random.normal(k, shape, dtype=jnp.float32)).astype(dtype)

    keys = jax.random.split(key, 7)
    return {
        "word_emb": norm(keys[0], (cfg["vocab"], H)),
        "pos_emb": norm(keys[1], (cfg["max_pos"], H)),
        "type_emb": norm(keys[2], (cfg["types"], H)),
        "emb_ln_g": jnp.ones((1, H), jnp.float32),
        "emb_ln_b": jnp.zeros((1, H), jnp.float32),
        # Per-layer stacked weights (leading L axis is streamed by the grid);
        # matmul weights in bf16, bias/LN params in f32.
        "wqkv": norm(keys[3], (L, H, 3 * H), dtype=jnp.bfloat16),
        "bqkv": jnp.zeros((L, 1, 3 * H), jnp.float32),
        "wo":   norm(keys[4], (L, H, H), dtype=jnp.bfloat16),
        "bo":   jnp.zeros((L, 1, H), jnp.float32),
        "ln1_g": jnp.ones((L, 1, H), jnp.float32),
        "ln1_b": jnp.zeros((L, 1, H), jnp.float32),
        "w1":   norm(keys[5], (L, H, F), dtype=jnp.bfloat16),
        "b1":   jnp.zeros((L, 1, F), jnp.float32),
        "w2":   norm(keys[6], (L, F, H), dtype=jnp.bfloat16),
        "b2":   jnp.zeros((L, 1, H), jnp.float32),
        "ln2_g": jnp.ones((L, 1, H), jnp.float32),
        "ln2_b": jnp.zeros((L, 1, H), jnp.float32),
    }


# --------------------------- VMEM budget helper ------------------------------

def _vmem_limit_bytes(S, H, F):
    bf16, f32 = 2, 4
    streamed = (
        S * H * f32 +                        # embedding block
        S * f32 +                            # mask row
        2 * H * f32 +                        # emb LN gamma/beta
        H * 3 * H * bf16 + 3 * H * f32 +     # Wqkv + bqkv
        H * H * bf16 + H * f32 +             # Wo + bo
        2 * H * f32 +                        # ln1 gamma/beta
        H * F * bf16 + F * f32 +             # W1 + b1
        F * H * bf16 + H * f32 +             # W2 + b2
        2 * H * f32                          # ln2 gamma/beta
    )
    out_block = H * f32
    scratch = 2 * S * H * f32                # x_ref + ctx_ref
    total = 2 * (streamed + out_block) + scratch   # double buffering
    return int(min(max(2 * total, 32 << 20), 100 << 20))


# ------------------------------- forward pass --------------------------------

def sentence_bert_forward(params, input_ids, attention_mask, cfg):
    B, S = input_ids.shape
    H, nh, L, F = cfg["hidden"], cfg["heads"], cfg["layers"], cfg["ffn"]
    dh = H // nh

    # Embedding gather stays in XLA glue (data-dependent gather).
    positions = jnp.arange(S, dtype=jnp.int32)
    token_type = jnp.zeros((B, S), dtype=jnp.int32)
    emb = (jnp.take(params["word_emb"], input_ids, axis=0)
           + jnp.take(params["pos_emb"], positions, axis=0)[None, :, :]
           + jnp.take(params["type_emb"], token_type, axis=0)
           ).astype(jnp.float32)                              # (B, S, H)
    mask_f = attention_mask.astype(jnp.float32).reshape(B, 1, S)

    kernel = functools.partial(_bert_layer_kernel, S=S, H=H, nh=nh, dh=dh, L=L)

    def b_spec(shape):                      # per-batch-element block
        return pl.BlockSpec(shape, lambda b, l: (b, 0, 0))

    def l_spec(shape):                      # per-layer streamed weight block
        return pl.BlockSpec(shape, lambda b, l: (l, 0, 0))

    grid_spec = pltpu.PrefetchScalarGridSpec(
        num_scalar_prefetch=0,
        grid=(B, L),
        in_specs=[
            b_spec((1, S, H)),                               # embeddings
            b_spec((1, 1, S)),                               # attention mask
            pl.BlockSpec((1, H), lambda b, l: (0, 0)),       # emb LN gamma
            pl.BlockSpec((1, H), lambda b, l: (0, 0)),       # emb LN beta
            l_spec((1, H, 3 * H)), l_spec((1, 1, 3 * H)),    # Wqkv, bqkv
            l_spec((1, H, H)),     l_spec((1, 1, H)),        # Wo, bo
            l_spec((1, 1, H)),     l_spec((1, 1, H)),        # ln1 gamma, beta
            l_spec((1, H, F)),     l_spec((1, 1, F)),        # W1, b1
            l_spec((1, F, H)),     l_spec((1, 1, H)),        # W2, b2
            l_spec((1, 1, H)),     l_spec((1, 1, H)),        # ln2 gamma, beta
        ],
        out_specs=pl.BlockSpec((1, 1, H), lambda b, l: (b, 0, 0)),
        scratch_shapes=[pltpu.VMEM((S, H), jnp.float32),     # residual stream
                        pltpu.VMEM((S, H), jnp.float32)],    # attention context
    )

    pooled = pl.pallas_call(
        kernel,
        out_shape=jax.ShapeDtypeStruct((B, 1, H), jnp.float32),
        grid_spec=grid_spec,
        compiler_params=pltpu.CompilerParams(
            dimension_semantics=("parallel", "arbitrary"),
            vmem_limit_bytes=_vmem_limit_bytes(S, H, F)),
    )(emb, mask_f,
      params["emb_ln_g"], params["emb_ln_b"],
      params["wqkv"], params["bqkv"], params["wo"], params["bo"],
      params["ln1_g"], params["ln1_b"],
      params["w1"], params["b1"], params["w2"], params["b2"],
      params["ln2_g"], params["ln2_b"])
    return pooled.reshape(B, H)


# ----------------------------------- main ------------------------------------

if __name__ == "__main__":
    cfg = dict(vocab=100, hidden=32, heads=4, layers=2, ffn=64,
               max_pos=16, types=2)
    B, S = 2, 8

    key = jax.random.PRNGKey(0)
    kp, kid = jax.random.split(key)
    params = init_params(kp, cfg)

    input_ids = jax.random.randint(kid, (B, S), 0, cfg["vocab"], dtype=jnp.int32)
    attention_mask = jnp.ones((B, S), dtype=jnp.int32).at[1, 6:].set(0)

    fwd = jax.jit(lambda p, ids, m: sentence_bert_forward(p, ids, m, cfg))
    out = jax.block_until_ready(fwd(params, input_ids, attention_mask))

    assert out.shape == (B, cfg["hidden"]) and out.dtype == jnp.float32
    assert bool(jnp.all(jnp.isfinite(out)))
    print("KERNEL_OK")
</pallas_src>

<mosaic_0001>
module attributes {stable_mosaic.version = 11 : i64} {
  func.func @_bert_layer_kernel(%arg0: i32, %arg1: i32, %arg2: memref<1x8x32xf32, #tpu.memory_space<vmem>>, %arg3: memref<1x1x8xf32, #tpu.memory_space<vmem>>, %arg4: memref<1x32xf32, #tpu.memory_space<vmem>>, %arg5: memref<1x32xf32, #tpu.memory_space<vmem>>, %arg6: memref<1x32x96xbf16, #tpu.memory_space<vmem>>, %arg7: memref<1x1x96xf32, #tpu.memory_space<vmem>>, %arg8: memref<1x32x32xbf16, #tpu.memory_space<vmem>>, %arg9: memref<1x1x32xf32, #tpu.memory_space<vmem>>, %arg10: memref<1x1x32xf32, #tpu.memory_space<vmem>>, %arg11: memref<1x1x32xf32, #tpu.memory_space<vmem>>, %arg12: memref<1x32x64xbf16, #tpu.memory_space<vmem>>, %arg13: memref<1x1x64xf32, #tpu.memory_space<vmem>>, %arg14: memref<1x64x32xbf16, #tpu.memory_space<vmem>>, %arg15: memref<1x1x32xf32, #tpu.memory_space<vmem>>, %arg16: memref<1x1x32xf32, #tpu.memory_space<vmem>>, %arg17: memref<1x1x32xf32, #tpu.memory_space<vmem>>, %arg18: memref<1x1x32xf32, #tpu.memory_space<vmem>>, %arg19: memref<8x32xf32, #tpu.memory_space<vmem>>, %arg20: memref<8x32xf32, #tpu.memory_space<vmem>>) attributes {dimension_semantics = [#tpu.dimension_semantics<parallel>, #tpu.dimension_semantics<arbitrary>], iteration_bounds = array<i64: 2, 2>, scalar_prefetch = 0 : i64, scratch_operands = 2 : i64, tpu.core_type = #tpu.core_type<tc>, window_params = [{transform_indices = @transform_0, window_bounds = array<i64: 1, 8, 32>}, {transform_indices = @transform_1, window_bounds = array<i64: 1, 1, 8>}, {pipeline_mode = #tpu.pipeline_mode<synchronous>, transform_indices = @transform_2, window_bounds = array<i64: 1, 32>}, {pipeline_mode = #tpu.pipeline_mode<synchronous>, transform_indices = @transform_3, window_bounds = array<i64: 1, 32>}, {transform_indices = @transform_4, window_bounds = array<i64: 1, 32, 96>}, {transform_indices = @transform_5, window_bounds = array<i64: 1, 1, 96>}, {transform_indices = @transform_6, window_bounds = array<i64: 1, 32, 32>}, {transform_indices = @transform_7, window_bounds = array<i64: 1, 1, 32>}, {transform_indices = @transform_8, window_bounds = array<i64: 1, 1, 32>}, {transform_indices = @transform_9, window_bounds = array<i64: 1, 1, 32>}, {transform_indices = @transform_10, window_bounds = array<i64: 1, 32, 64>}, {transform_indices = @transform_11, window_bounds = array<i64: 1, 1, 64>}, {transform_indices = @transform_12, window_bounds = array<i64: 1, 64, 32>}, {transform_indices = @transform_13, window_bounds = array<i64: 1, 1, 32>}, {transform_indices = @transform_14, window_bounds = array<i64: 1, 1, 32>}, {transform_indices = @transform_15, window_bounds = array<i64: 1, 1, 32>}, {transform_indices = @transform_16, window_bounds = array<i64: 1, 1, 32>}]} {
    %c0_i32 = arith.constant 0 : i32
    %0 = arith.cmpi eq, %arg1, %c0_i32 : i32
    %1 = arith.extui %0 : i1 to i32
    %c0_i32_0 = arith.constant 0 : i32
    %2 = arith.cmpi ne, %1, %c0_i32_0 : i32
    scf.if %2 {
      %c0_87 = arith.constant 0 : index
      %c0_88 = arith.constant 0 : index
      %c0_89 = arith.constant 0 : index
      %198 = vector.load %arg2[%c0_87, %c0_88, %c0_89] : memref<1x8x32xf32, #tpu.memory_space<vmem>>, vector<1x8x32xf32>
      %199 = vector.shape_cast %198 : vector<1x8x32xf32> to vector<8x32xf32>
      %c0_90 = arith.constant 0 : index
      %c0_91 = arith.constant 0 : index
      %200 = vector.load %arg4[%c0_90, %c0_91] : memref<1x32xf32, #tpu.memory_space<vmem>>, vector<1x32xf32>
      %c0_92 = arith.constant 0 : index
      %c0_93 = arith.constant 0 : index
      %201 = vector.load %arg5[%c0_92, %c0_93] : memref<1x32xf32, #tpu.memory_space<vmem>>, vector<1x32xf32>
      %cst_94 = arith.constant dense<0.000000e+00> : vector<8xf32>
      %202 = vector.multi_reduction <add>, %199, %cst_94 [1] : vector<8x32xf32> to vector<8xf32>
      %203 = vector.shape_cast %202 : vector<8xf32> to vector<8x1xf32>
      %cst_95 = arith.constant 3.200000e+01 : f32
      %204 = vector.broadcast %cst_95 : f32 to vector<8x1xf32>
      %205 = arith.divf %203, %204 : vector<8x1xf32>
      %206 = vector.broadcast %205 : vector<8x1xf32> to vector<8x32xf32>
      %207 = arith.subf %199, %206 : vector<8x32xf32>
      %208 = arith.mulf %207, %207 : vector<8x32xf32>
      %cst_96 = arith.constant dense<0.000000e+00> : vector<8xf32>
      %209 = vector.multi_reduction <add>, %208, %cst_96 [1] : vector<8x32xf32> to vector<8xf32>
      %210 = vector.shape_cast %209 : vector<8xf32> to vector<8x1xf32>
      %cst_97 = arith.constant 3.200000e+01 : f32
      %211 = vector.broadcast %cst_97 : f32 to vector<8x1xf32>
      %212 = arith.divf %210, %211 : vector<8x1xf32>
      %213 = vector.broadcast %205 : vector<8x1xf32> to vector<8x32xf32>
      %214 = arith.subf %199, %213 : vector<8x32xf32>
      %cst_98 = arith.constant 9.99999996E-13 : f32
      %215 = vector.broadcast %cst_98 : f32 to vector<8x1xf32>
      %216 = arith.addf %212, %215 : vector<8x1xf32>
      %217 = math.rsqrt %216 : vector<8x1xf32>
      %218 = vector.broadcast %217 : vector<8x1xf32> to vector<8x32xf32>
      %219 = arith.mulf %214, %218 : vector<8x32xf32>
      %220 = vector.broadcast %200 : vector<1x32xf32> to vector<8x32xf32>
      %221 = arith.mulf %219, %220 : vector<8x32xf32>
      %222 = vector.broadcast %201 : vector<1x32xf32> to vector<8x32xf32>
      %223 = arith.addf %221, %222 : vector<8x32xf32>
      %c0_99 = arith.constant 0 : index
      %c0_100 = arith.constant 0 : index
      %224 = vector.load %arg19[%c0_99, %c0_100] : memref<8x32xf32, #tpu.memory_space<vmem>>, vector<8x32xf32>
      tpu.vector_store %arg19[%c0_99, %c0_100], %223 {strides = array<i32>} : memref<8x32xf32, #tpu.memory_space<vmem>>, vector<8x32xf32>,
    } else {
    }
    %c0 = arith.constant 0 : index
    %c0_1 = arith.constant 0 : index
    %3 = vector.load %arg19[%c0, %c0_1] : memref<8x32xf32, #tpu.memory_space<vmem>>, vector<8x32xf32>
    %c0_2 = arith.constant 0 : index
    %c0_3 = arith.constant 0 : index
    %c0_4 = arith.constant 0 : index
    %4 = vector.load %arg3[%c0_2, %c0_3, %c0_4] : memref<1x1x8xf32, #tpu.memory_space<vmem>>, vector<1x1x8xf32>
    %5 = vector.shape_cast %4 : vector<1x1x8xf32> to vector<1x8xf32>
    %cst = arith.constant 1.000000e+00 : f32
    %6 = vector.broadcast %cst : f32 to vector<1x8xf32>
    %7 = arith.subf %6, %5 : vector<1x8xf32>
    %cst_5 = arith.constant -1.000000e+09 : f32
    %8 = vector.broadcast %cst_5 : f32 to vector<1x8xf32>
    %9 = arith.mulf %7, %8 : vector<1x8xf32>
    %10 = arith.truncf %3 : vector<8x32xf32> to vector<8x32xbf16>
    %c0_6 = arith.constant 0 : index
    %c0_7 = arith.constant 0 : index
    %c0_8 = arith.constant 0 : index
    %11 = vector.load %arg6[%c0_6, %c0_7, %c0_8] : memref<1x32x96xbf16, #tpu.memory_space<vmem>>, vector<1x32x96xbf16>
    %12 = vector.shape_cast %11 : vector<1x32x96xbf16> to vector<32x96xbf16>
    %cst_9 = arith.constant dense<0.000000e+00> : vector<8x96xf32>
    %13 = tpu.matmul %10, %12, %cst_9 {dimension_numbers = #tpu.dot_dimension_numbers<[1], [0], [0], [1], [0, 0, 1, 1], [], []>} : vector<8x32xbf16>, vector<32x96xbf16>, vector<8x96xf32> -> vector<8x96xf32>
    %c0_10 = arith.constant 0 : index
    %c0_11 = arith.constant 0 : index
    %c0_12 = arith.constant 0 : index
    %14 = vector.load %arg7[%c0_10, %c0_11, %c0_12] : memref<1x1x96xf32, #tpu.memory_space<vmem>>, vector<1x1x96xf32>
    %15 = vector.shape_cast %14 : vector<1x1x96xf32> to vector<1x96xf32>
    %16 = vector.broadcast %15 : vector<1x96xf32> to vector<8x96xf32>
    %17 = arith.addf %13, %16 : vector<8x96xf32>
    %18 = vector.extract_strided_slice %17 {offsets = [0, 0], sizes = [8, 32], strides = [1, 1]} : vector<8x96xf32> to vector<8x32xf32>
    %cst_13 = arith.constant 0.353553385 : f32
    %19 = vector.broadcast %cst_13 : f32 to vector<8x32xf32>
    %20 = arith.mulf %18, %19 : vector<8x32xf32>
    %21 = arith.truncf %20 : vector<8x32xf32> to vector<8x32xbf16>
    %22 = vector.extract_strided_slice %17 {offsets = [0, 32], sizes = [8, 32], strides = [1, 1]} : vector<8x96xf32> to vector<8x32xf32>
    %23 = arith.truncf %22 : vector<8x32xf32> to vector<8x32xbf16>
    %24 = vector.extract_strided_slice %17 {offsets = [0, 64], sizes = [8, 32], strides = [1, 1]} : vector<8x96xf32> to vector<8x32xf32>
    %25 = arith.truncf %24 : vector<8x32xf32> to vector<8x32xbf16>
    %26 = vector.extract_strided_slice %21 {offsets = [0, 0], sizes = [8, 8], strides = [1, 1]} : vector<8x32xbf16> to vector<8x8xbf16>
    %27 = vector.extract_strided_slice %23 {offsets = [0, 0], sizes = [8, 8], strides = [1, 1]} : vector<8x32xbf16> to vector<8x8xbf16>
    %28 = vector.extract_strided_slice %25 {offsets = [0, 0], sizes = [8, 8], strides = [1, 1]} : vector<8x32xbf16> to vector<8x8xbf16>
    %cst_14 = arith.constant dense<0.000000e+00> : vector<8x8xf32>
    %29 = tpu.matmul %26, %27, %cst_14 {dimension_numbers = #tpu.dot_dimension_numbers<[1], [1], [0], [0], [0, 0, 1, 0], [], []>} : vector<8x8xbf16>, vector<8x8xbf16>, vector<8x8xf32> -> vector<8x8xf32>
    %30 = vector.broadcast %9 : vector<1x8xf32> to vector<8x8xf32>
    %31 = arith.addf %29, %30 : vector<8x8xf32>
    %cst_15 = arith.constant dense<0xFF800000> : vector<8xf32>
    %32 = vector.multi_reduction <maximumf>, %31, %cst_15 [1] : vector<8x8xf32> to vector<8xf32>
    %33 = vector.shape_cast %32 : vector<8xf32> to vector<8x1xf32>
    %34 = vector.broadcast %33 : vector<8x1xf32> to vector<8x8xf32>
    %35 = arith.subf %31, %34 : vector<8x8xf32>
    %36 = math.exp %35 : vector<8x8xf32>
    %cst_16 = arith.constant dense<0.000000e+00> : vector<8xf32>
    %37 = vector.multi_reduction <add>, %36, %cst_16 [1] : vector<8x8xf32> to vector<8xf32>
    %38 = vector.shape_cast %37 : vector<8xf32> to vector<8x1xf32>
    %39 = tpu.reciprocal %38 {approx = true} : vector<8x1xf32> -> vector<8x1xf32>
    %40 = vector.broadcast %39 : vector<8x1xf32> to vector<8x8xf32>
    %41 = arith.mulf %36, %40 : vector<8x8xf32>
    %42 = arith.truncf %41 : vector<8x8xf32> to vector<8x8xbf16>
    %cst_17 = arith.constant dense<0.000000e+00> : vector<8x8xf32>
    %43 = tpu.matmul %42, %28, %cst_17 {dimension_numbers = #tpu.dot_dimension_numbers<[1], [0], [0], [1], [0, 0, 1, 1], [], []>} : vector<8x8xbf16>, vector<8x8xbf16>, vector<8x8xf32> -> vector<8x8xf32>
    %c0_18 = arith.constant 0 : index
    %c0_19 = arith.constant 0 : index
    %44 = vector.load %arg20[%c0_18, %c0_19] : memref<8x32xf32, #tpu.memory_space<vmem>>, vector<8x8xf32>
    tpu.vector_store %arg20[%c0_18, %c0_19], %43 {strides = array<i32>} : memref<8x32xf32, #tpu.memory_space<vmem>>, vector<8x8xf32>,
    %45 = vector.extract_strided_slice %21 {offsets = [0, 8], sizes = [8, 8], strides = [1, 1]} : vector<8x32xbf16> to vector<8x8xbf16>
    %46 = vector.extract_strided_slice %23 {offsets = [0, 8], sizes = [8, 8], strides = [1, 1]} : vector<8x32xbf16> to vector<8x8xbf16>
    %47 = vector.extract_strided_slice %25 {offsets = [0, 8], sizes = [8, 8], strides = [1, 1]} : vector<8x32xbf16> to vector<8x8xbf16>
    %cst_20 = arith.constant dense<0.000000e+00> : vector<8x8xf32>
    %48 = tpu.matmul %45, %46, %cst_20 {dimension_numbers = #tpu.dot_dimension_numbers<[1], [1], [0], [0], [0, 0, 1, 0], [], []>} : vector<8x8xbf16>, vector<8x8xbf16>, vector<8x8xf32> -> vector<8x8xf32>
    %49 = vector.broadcast %9 : vector<1x8xf32> to vector<8x8xf32>
    %50 = arith.addf %48, %49 : vector<8x8xf32>
    %cst_21 = arith.constant dense<0xFF800000> : vector<8xf32>
    %51 = vector.multi_reduction <maximumf>, %50, %cst_21 [1] : vector<8x8xf32> to vector<8xf32>
    %52 = vector.shape_cast %51 : vector<8xf32> to vector<8x1xf32>
    %53 = vector.broadcast %52 : vector<8x1xf32> to vector<8x8xf32>
    %54 = arith.subf %50, %53 : vector<8x8xf32>
    %55 = math.exp %54 : vector<8x8xf32>
    %cst_22 = arith.constant dense<0.000000e+00> : vector<8xf32>
    %56 = vector.multi_reduction <add>, %55, %cst_22 [1] : vector<8x8xf32> to vector<8xf32>
    %57 = vector.shape_cast %56 : vector<8xf32> to vector<8x1xf32>
    %58 = tpu.reciprocal %57 {approx = true} : vector<8x1xf32> -> vector<8x1xf32>
    %59 = vector.broadcast %58 : vector<8x1xf32> to vector<8x8xf32>
    %60 = arith.mulf %55, %59 : vector<8x8xf32>
    %61 = arith.truncf %60 : vector<8x8xf32> to vector<8x8xbf16>
    %cst_23 = arith.constant dense<0.000000e+00> : vector<8x8xf32>
    %62 = tpu.matmul %61, %47, %cst_23 {dimension_numbers = #tpu.dot_dimension_numbers<[1], [0], [0], [1], [0, 0, 1, 1], [], []>} : vector<8x8xbf16>, vector<8x8xbf16>, vector<8x8xf32> -> vector<8x8xf32>
    %c0_24 = arith.constant 0 : index
    %c8 = arith.constant 8 : index
    %63 = vector.load %arg20[%c0_24, %c8] : memref<8x32xf32, #tpu.memory_space<vmem>>, vector<8x8xf32>
    tpu.vector_store %arg20[%c0_24, %c8], %62 {strides = array<i32>} : memref<8x32xf32, #tpu.memory_space<vmem>>, vector<8x8xf32>,
    %64 = vector.extract_strided_slice %21 {offsets = [0, 16], sizes = [8, 8], strides = [1, 1]} : vector<8x32xbf16> to vector<8x8xbf16>
    %65 = vector.extract_strided_slice %23 {offsets = [0, 16], sizes = [8, 8], strides = [1, 1]} : vector<8x32xbf16> to vector<8x8xbf16>
    %66 = vector.extract_strided_slice %25 {offsets = [0, 16], sizes = [8, 8], strides = [1, 1]} : vector<8x32xbf16> to vector<8x8xbf16>
    %cst_25 = arith.constant dense<0.000000e+00> : vector<8x8xf32>
    %67 = tpu.matmul %64, %65, %cst_25 {dimension_numbers = #tpu.dot_dimension_numbers<[1], [1], [0], [0], [0, 0, 1, 0], [], []>} : vector<8x8xbf16>, vector<8x8xbf16>, vector<8x8xf32> -> vector<8x8xf32>
    %68 = vector.broadcast %9 : vector<1x8xf32> to vector<8x8xf32>
    %69 = arith.addf %67, %68 : vector<8x8xf32>
    %cst_26 = arith.constant dense<0xFF800000> : vector<8xf32>
    %70 = vector.multi_reduction <maximumf>, %69, %cst_26 [1] : vector<8x8xf32> to vector<8xf32>
    %71 = vector.shape_cast %70 : vector<8xf32> to vector<8x1xf32>
    %72 = vector.broadcast %71 : vector<8x1xf32> to vector<8x8xf32>
    %73 = arith.subf %69, %72 : vector<8x8xf32>
    %74 = math.exp %73 : vector<8x8xf32>
    %cst_27 = arith.constant dense<0.000000e+00> : vector<8xf32>
    %75 = vector.multi_reduction <add>, %74, %cst_27 [1] : vector<8x8xf32> to vector<8xf32>
    %76 = vector.shape_cast %75 : vector<8xf32> to vector<8x1xf32>
    %77 = tpu.reciprocal %76 {approx = true} : vector<8x1xf32> -> vector<8x1xf32>
    %78 = vector.broadcast %77 : vector<8x1xf32> to vector<8x8xf32>
    %79 = arith.mulf %74, %78 : vector<8x8xf32>
    %80 = arith.truncf %79 : vector<8x8xf32> to vector<8x8xbf16>
    %cst_28 = arith.constant dense<0.000000e+00> : vector<8x8xf32>
    %81 = tpu.matmul %80, %66, %cst_28 {dimension_numbers = #tpu.dot_dimension_numbers<[1], [0], [0], [1], [0, 0, 1, 1], [], []>} : vector<8x8xbf16>, vector<8x8xbf16>, vector<8x8xf32> -> vector<8x8xf32>
    %c0_29 = arith.constant 0 : index
    %c16 = arith.constant 16 : index
    %82 = vector.load %arg20[%c0_29, %c16] : memref<8x32xf32, #tpu.memory_space<vmem>>, vector<8x8xf32>
    tpu.vector_store %arg20[%c0_29, %c16], %81 {strides = array<i32>} : memref<8x32xf32, #tpu.memory_space<vmem>>, vector<8x8xf32>,
    %83 = vector.extract_strided_slice %21 {offsets = [0, 24], sizes = [8, 8], strides = [1, 1]} : vector<8x32xbf16> to vector<8x8xbf16>
    %84 = vector.extract_strided_slice %23 {offsets = [0, 24], sizes = [8, 8], strides = [1, 1]} : vector<8x32xbf16> to vector<8x8xbf16>
    %85 = vector.extract_strided_slice %25 {offsets = [0, 24], sizes = [8, 8], strides = [1, 1]} : vector<8x32xbf16> to vector<8x8xbf16>
    %cst_30 = arith.constant dense<0.000000e+00> : vector<8x8xf32>
    %86 = tpu.matmul %83, %84, %cst_30 {dimension_numbers = #tpu.dot_dimension_numbers<[1], [1], [0], [0], [0, 0, 1, 0], [], []>} : vector<8x8xbf16>, vector<8x8xbf16>, vector<8x8xf32> -> vector<8x8xf32>
    %87 = vector.broadcast %9 : vector<1x8xf32> to vector<8x8xf32>
    %88 = arith.addf %86, %87 : vector<8x8xf32>
    %cst_31 = arith.constant dense<0xFF800000> : vector<8xf32>
    %89 = vector.multi_reduction <maximumf>, %88, %cst_31 [1] : vector<8x8xf32> to vector<8xf32>
    %90 = vector.shape_cast %89 : vector<8xf32> to vector<8x1xf32>
    %91 = vector.broadcast %90 : vector<8x1xf32> to vector<8x8xf32>
    %92 = arith.subf %88, %91 : vector<8x8xf32>
    %93 = math.exp %92 : vector<8x8xf32>
    %cst_32 = arith.constant dense<0.000000e+00> : vector<8xf32>
    %94 = vector.multi_reduction <add>, %93, %cst_32 [1] : vector<8x8xf32> to vector<8xf32>
    %95 = vector.shape_cast %94 : vector<8xf32> to vector<8x1xf32>
    %96 = tpu.reciprocal %95 {approx = true} : vector<8x1xf32> -> vector<8x1xf32>
    %97 = vector.broadcast %96 : vector<8x1xf32> to vector<8x8xf32>
    %98 = arith.mulf %93, %97 : vector<8x8xf32>
    %99 = arith.truncf %98 : vector<8x8xf32> to vector<8x8xbf16>
    %cst_33 = arith.constant dense<0.000000e+00> : vector<8x8xf32>
    %100 = tpu.matmul %99, %85, %cst_33 {dimension_numbers = #tpu.dot_dimension_numbers<[1], [0], [0], [1], [0, 0, 1, 1], [], []>} : vector<8x8xbf16>, vector<8x8xbf16>, vector<8x8xf32> -> vector<8x8xf32>
    %c0_34 = arith.constant 0 : index
    %c24 = arith.constant 24 : index
    %101 = vector.load %arg20[%c0_34, %c24] : memref<8x32xf32, #tpu.memory_space<vmem>>, vector<8x8xf32>
    tpu.vector_store %arg20[%c0_34, %c24], %100 {strides = array<i32>} : memref<8x32xf32, #tpu.memory_space<vmem>>, vector<8x8xf32>,
    %c0_35 = arith.constant 0 : index
    %c0_36 = arith.constant 0 : index
    %102 = vector.load %arg20[%c0_35, %c0_36] : memref<8x32xf32, #tpu.memory_space<vmem>>, vector<8x32xf32>
    %103 = arith.truncf %102 : vector<8x32xf32> to vector<8x32xbf16>
    %c0_37 = arith.constant 0 : index
    %c0_38 = arith.constant 0 : index
    %c0_39 = arith.constant 0 : index
    %104 = vector.load %arg8[%c0_37, %c0_38, %c0_39] : memref<1x32x32xbf16, #tpu.memory_space<vmem>>, vector<1x32x32xbf16>
    %105 = vector.shape_cast %104 : vector<1x32x32xbf16> to vector<32x32xbf16>
    %cst_40 = arith.constant dense<0.000000e+00> : vector<8x32xf32>
    %106 = tpu.matmul %103, %105, %cst_40 {dimension_numbers = #tpu.dot_dimension_numbers<[1], [0], [0], [1], [0, 0, 1, 1], [], []>} : vector<8x32xbf16>, vector<32x32xbf16>, vector<8x32xf32> -> vector<8x32xf32>
    %c0_41 = arith.constant 0 : index
    %c0_42 = arith.constant 0 : index
    %c0_43 = arith.constant 0 : index
    %107 = vector.load %arg9[%c0_41, %c0_42, %c0_43] : memref<1x1x32xf32, #tpu.memory_space<vmem>>, vector<1x1x32xf32>
    %108 = vector.shape_cast %107 : vector<1x1x32xf32> to vector<1x32xf32>
    %109 = vector.broadcast %108 : vector<1x32xf32> to vector<8x32xf32>
    %110 = arith.addf %106, %109 : vector<8x32xf32>
    %111 = arith.addf %3, %110 : vector<8x32xf32>
    %c0_44 = arith.constant 0 : index
    %c0_45 = arith.constant 0 : index
    %c0_46 = arith.constant 0 : index
    %112 = vector.load %arg10[%c0_44, %c0_45, %c0_46] : memref<1x1x32xf32, #tpu.memory_space<vmem>>, vector<1x1x32xf32>
    %113 = vector.shape_cast %112 : vector<1x1x32xf32> to vector<1x32xf32>
    %c0_47 = arith.constant 0 : index
    %c0_48 = arith.constant 0 : index
    %c0_49 = arith.constant 0 : index
    %114 = vector.load %arg11[%c0_47, %c0_48, %c0_49] : memref<1x1x32xf32, #tpu.memory_space<vmem>>, vector<1x1x32xf32>
    %115 = vector.shape_cast %114 : vector<1x1x32xf32> to vector<1x32xf32>
    %cst_50 = arith.constant dense<0.000000e+00> : vector<8xf32>
    %116 = vector.multi_reduction <add>, %111, %cst_50 [1] : vector<8x32xf32> to vector<8xf32>
    %117 = vector.shape_cast %116 : vector<8xf32> to vector<8x1xf32>
    %cst_51 = arith.constant 3.200000e+01 : f32
    %118 = vector.broadcast %cst_51 : f32 to vector<8x1xf32>
    %119 = arith.divf %117, %118 : vector<8x1xf32>
    %120 = vector.broadcast %119 : vector<8x1xf32> to vector<8x32xf32>
    %121 = arith.subf %111, %120 : vector<8x32xf32>
    %122 = arith.mulf %121, %121 : vector<8x32xf32>
    %cst_52 = arith.constant dense<0.000000e+00> : vector<8xf32>
    %123 = vector.multi_reduction <add>, %122, %cst_52 [1] : vector<8x32xf32> to vector<8xf32>
    %124 = vector.shape_cast %123 : vector<8xf32> to vector<8x1xf32>
    %cst_53 = arith.constant 3.200000e+01 : f32
    %125 = vector.broadcast %cst_53 : f32 to vector<8x1xf32>
    %126 = arith.divf %124, %125 : vector<8x1xf32>
    %127 = vector.broadcast %119 : vector<8x1xf32> to vector<8x32xf32>
    %128 = arith.subf %111, %127 : vector<8x32xf32>
    %cst_54 = arith.constant 9.99999996E-13 : f32
    %129 = vector.broadcast %cst_54 : f32 to vector<8x1xf32>
    %130 = arith.addf %126, %129 : vector<8x1xf32>
    %131 = math.rsqrt %130 : vector<8x1xf32>
    %132 = vector.broadcast %131 : vector<8x1xf32> to vector<8x32xf32>
    %133 = arith.mulf %128, %132 : vector<8x32xf32>
    %134 = vector.broadcast %113 : vector<1x32xf32> to vector<8x32xf32>
    %135 = arith.mulf %133, %134 : vector<8x32xf32>
    %136 = vector.broadcast %115 : vector<1x32xf32> to vector<8x32xf32>
    %137 = arith.addf %135, %136 : vector<8x32xf32>
    %138 = arith.truncf %137 : vector<8x32xf32> to vector<8x32xbf16>
    %c0_55 = arith.constant 0 : index
    %c0_56 = arith.constant 0 : index
    %c0_57 = arith.constant 0 : index
    %139 = vector.load %arg12[%c0_55, %c0_56, %c0_57] : memref<1x32x64xbf16, #tpu.memory_space<vmem>>, vector<1x32x64xbf16>
    %140 = vector.shape_cast %139 : vector<1x32x64xbf16> to vector<32x64xbf16>
    %cst_58 = arith.constant dense<0.000000e+00> : vector<8x64xf32>
    %141 = tpu.matmul %138, %140, %cst_58 {dimension_numbers = #tpu.dot_dimension_numbers<[1], [0], [0], [1], [0, 0, 1, 1], [], []>} : vector<8x32xbf16>, vector<32x64xbf16>, vector<8x64xf32> -> vector<8x64xf32>
    %c0_59 = arith.constant 0 : index
    %c0_60 = arith.constant 0 : index
    %c0_61 = arith.constant 0 : index
    %142 = vector.load %arg13[%c0_59, %c0_60, %c0_61] : memref<1x1x64xf32, #tpu.memory_space<vmem>>, vector<1x1x64xf32>
    %143 = vector.shape_cast %142 : vector<1x1x64xf32> to vector<1x64xf32>
    %144 = vector.broadcast %143 : vector<1x64xf32> to vector<8x64xf32>
    %145 = arith.addf %141, %144 : vector<8x64xf32>
    %cst_62 = arith.constant 5.000000e-01 : f32
    %146 = vector.broadcast %cst_62 : f32 to vector<8x64xf32>
    %147 = arith.mulf %146, %145 : vector<8x64xf32>
    %cst_63 = arith.constant 4.471500e-02 : f32
    %148 = vector.broadcast %cst_63 : f32 to vector<8x64xf32>
    %149 = arith.mulf %148, %145 : vector<8x64xf32>
    %150 = arith.mulf %149, %145 : vector<8x64xf32>
    %151 = arith.mulf %150, %145 : vector<8x64xf32>
    %152 = arith.addf %145, %151 : vector<8x64xf32>
    %cst_64 = arith.constant 0.797884583 : f32
    %153 = vector.broadcast %cst_64 : f32 to vector<8x64xf32>
    %154 = arith.mulf %153, %152 : vector<8x64xf32>
    %155 = math.tanh %154 : vector<8x64xf32>
    %cst_65 = arith.constant 1.000000e+00 : f32
    %156 = vector.broadcast %cst_65 : f32 to vector<8x64xf32>
    %157 = arith.addf %156, %155 : vector<8x64xf32>
    %158 = arith.mulf %147, %157 : vector<8x64xf32>
    %159 = arith.truncf %158 : vector<8x64xf32> to vector<8x64xbf16>
    %c0_66 = arith.constant 0 : index
    %c0_67 = arith.constant 0 : index
    %c0_68 = arith.constant 0 : index
    %160 = vector.load %arg14[%c0_66, %c0_67, %c0_68] : memref<1x64x32xbf16, #tpu.memory_space<vmem>>, vector<1x64x32xbf16>
    %161 = vector.shape_cast %160 : vector<1x64x32xbf16> to vector<64x32xbf16>
    %cst_69 = arith.constant dense<0.000000e+00> : vector<8x32xf32>
    %162 = tpu.matmul %159, %161, %cst_69 {dimension_numbers = #tpu.dot_dimension_numbers<[1], [0], [0], [1], [0, 0, 1, 1], [], []>} : vector<8x64xbf16>, vector<64x32xbf16>, vector<8x32xf32> -> vector<8x32xf32>
    %c0_70 = arith.constant 0 : index
    %c0_71 = arith.constant 0 : index
    %c0_72 = arith.constant 0 : index
    %163 = vector.load %arg15[%c0_70, %c0_71, %c0_72] : memref<1x1x32xf32, #tpu.memory_space<vmem>>, vector<1x1x32xf32>
    %164 = vector.shape_cast %163 : vector<1x1x32xf32> to vector<1x32xf32>
    %165 = vector.broadcast %164 : vector<1x32xf32> to vector<8x32xf32>
    %166 = arith.addf %162, %165 : vector<8x32xf32>
    %167 = arith.addf %137, %166 : vector<8x32xf32>
    %c0_73 = arith.constant 0 : index
    %c0_74 = arith.constant 0 : index
    %c0_75 = arith.constant 0 : index
    %168 = vector.load %arg16[%c0_73, %c0_74, %c0_75] : memref<1x1x32xf32, #tpu.memory_space<vmem>>, vector<1x1x32xf32>
    %169 = vector.shape_cast %168 : vector<1x1x32xf32> to vector<1x32xf32>
    %c0_76 = arith.constant 0 : index
    %c0_77 = arith.constant 0 : index
    %c0_78 = arith.constant 0 : index
    %170 = vector.load %arg17[%c0_76, %c0_77, %c0_78] : memref<1x1x32xf32, #tpu.memory_space<vmem>>, vector<1x1x32xf32>
    %171 = vector.shape_cast %170 : vector<1x1x32xf32> to vector<1x32xf32>
    %cst_79 = arith.constant dense<0.000000e+00> : vector<8xf32>
    %172 = vector.multi_reduction <add>, %167, %cst_79 [1] : vector<8x32xf32> to vector<8xf32>
    %173 = vector.shape_cast %172 : vector<8xf32> to vector<8x1xf32>
    %cst_80 = arith.constant 3.200000e+01 : f32
    %174 = vector.broadcast %cst_80 : f32 to vector<8x1xf32>
    %175 = arith.divf %173, %174 : vector<8x1xf32>
    %176 = vector.broadcast %175 : vector<8x1xf32> to vector<8x32xf32>
    %177 = arith.subf %167, %176 : vector<8x32xf32>
    %178 = arith.mulf %177, %177 : vector<8x32xf32>
    %cst_81 = arith.constant dense<0.000000e+00> : vector<8xf32>
    %179 = vector.multi_reduction <add>, %178, %cst_81 [1] : vector<8x32xf32> to vector<8xf32>
    %180 = vector.shape_cast %179 : vector<8xf32> to vector<8x1xf32>
    %cst_82 = arith.constant 3.200000e+01 : f32
    %181 = vector.broadcast %cst_82 : f32 to vector<8x1xf32>
    %182 = arith.divf %180, %181 : vector<8x1xf32>
    %183 = vector.broadcast %175 : vector<8x1xf32> to vector<8x32xf32>
    %184 = arith.subf %167, %183 : vector<8x32xf32>
    %cst_83 = arith.constant 9.99999996E-13 : f32
    %185 = vector.broadcast %cst_83 : f32 to vector<8x1xf32>
    %186 = arith.addf %182, %185 : vector<8x1xf32>
    %187 = math.rsqrt %186 : vector<8x1xf32>
    %188 = vector.broadcast %187 : vector<8x1xf32> to vector<8x32xf32>
    %189 = arith.mulf %184, %188 : vector<8x32xf32>
    %190 = vector.broadcast %169 : vector<1x32xf32> to vector<8x32xf32>
    %191 = arith.mulf %189, %190 : vector<8x32xf32>
    %192 = vector.broadcast %171 : vector<1x32xf32> to vector<8x32xf32>
    %193 = arith.addf %191, %192 : vector<8x32xf32>
    %c0_84 = arith.constant 0 : index
    %c0_85 = arith.constant 0 : index
    %194 = vector.load %arg19[%c0_84, %c0_85] : memref<8x32xf32, #tpu.memory_space<vmem>>, vector<8x32xf32>
    tpu.vector_store %arg19[%c0_84, %c0_85], %193 {strides = array<i32>} : memref<8x32xf32, #tpu.memory_space<vmem>>, vector<8x32xf32>,
    %c1_i32 = arith.constant 1 : i32
    %195 = arith.cmpi eq, %arg1, %c1_i32 : i32
    %196 = arith.extui %195 : i1 to i32
    %c0_i32_86 = arith.constant 0 : i32
    %197 = arith.cmpi ne, %196, %c0_i32_86 : i32
    scf.if %197 {
      %cst_87 = arith.constant dense<0.000000e+00> : vector<32xf32>
      %198 = vector.multi_reduction <add>, %193, %cst_87 [0] : vector<8x32xf32> to vector<32xf32>
      %199 = vector.shape_cast %198 : vector<32xf32> to vector<1x32xf32>
      %cst_88 = arith.constant 8.000000e+00 : f32
      %200 = vector.broadcast %cst_88 : f32 to vector<1x32xf32>
      %201 = arith.divf %199, %200 : vector<1x32xf32>
      %c0_89 = arith.constant 0 : index
      %c0_90 = arith.constant 0 : index
      %c0_91 = arith.constant 0 : index
      %202 = vector.load %arg18[%c0_89, %c0_90, %c0_91] : memref<1x1x32xf32, #tpu.memory_space<vmem>>, vector<1x1x32xf32>
      %203 = vector.shape_cast %202 : vector<1x1x32xf32> to vector<1x32xf32>
      %204 = vector.shape_cast %201 : vector<1x32xf32> to vector<1x1x32xf32>
      tpu.vector_store %arg18[%c0_89, %c0_90, %c0_91], %204 {strides = array<i32>} : memref<1x1x32xf32, #tpu.memory_space<vmem>>, vector<1x1x32xf32>,
    } else {
    }
    return
  }
  func.func @transform_0(%arg0: i32, %arg1: i32) -> (i32, i32, i32) {
    %c0_i32 = arith.constant 0 : i32
    %c0_i32_0 = arith.constant 0 : i32
    %c0_i32_1 = arith.constant 0 : i32
    return %arg0, %c0_i32, %c0_i32_0 : i32, i32, i32
  }
  func.func @transform_1(%arg0: i32, %arg1: i32) -> (i32, i32, i32) {
    %c0_i32 = arith.constant 0 : i32
    %c0_i32_0 = arith.constant 0 : i32
    %c0_i32_1 = arith.constant 0 : i32
    return %arg0, %c0_i32, %c0_i32_0 : i32, i32, i32
  }
  func.func @transform_2(%arg0: i32, %arg1: i32) -> (i32, i32) {
    %c0_i32 = arith.constant 0 : i32
    %c0_i32_0 = arith.constant 0 : i32
    %c0_i32_1 = arith.constant 0 : i32
    return %c0_i32, %c0_i32_0 : i32, i32
  }
  func.func @transform_3(%arg0: i32, %arg1: i32) -> (i32, i32) {
    %c0_i32 = arith.constant 0 : i32
    %c0_i32_0 = arith.constant 0 : i32
    %c0_i32_1 = arith.constant 0 : i32
    return %c0_i32, %c0_i32_0 : i32, i32
  }
  func.func @transform_4(%arg0: i32, %arg1: i32) -> (i32, i32, i32) {
    %c0_i32 = arith.constant 0 : i32
    %c0_i32_0 = arith.constant 0 : i32
    %c0_i32_1 = arith.constant 0 : i32
    return %arg1, %c0_i32, %c0_i32_0 : i32, i32, i32
  }
  func.func @transform_5(%arg0: i32, %arg1: i32) -> (i32, i32, i32) {
    %c0_i32 = arith.constant 0 : i32
    %c0_i32_0 = arith.constant 0 : i32
    %c0_i32_1 = arith.constant 0 : i32
    return %arg1, %c0_i32, %c0_i32_0 : i32, i32, i32
  }
  func.func @transform_6(%arg0: i32, %arg1: i32) -> (i32, i32, i32) {
    %c0_i32 = arith.constant 0 : i32
    %c0_i32_0 = arith.constant 0 : i32
    %c0_i32_1 = arith.constant 0 : i32
    return %arg1, %c0_i32, %c0_i32_0 : i32, i32, i32
  }
  func.func @transform_7(%arg0: i32, %arg1: i32) -> (i32, i32, i32) {
    %c0_i32 = arith.constant 0 : i32
    %c0_i32_0 = arith.constant 0 : i32
    %c0_i32_1 = arith.constant 0 : i32
    return %arg1, %c0_i32, %c0_i32_0 : i32, i32, i32
  }
  func.func @transform_8(%arg0: i32, %arg1: i32) -> (i32, i32, i32) {
    %c0_i32 = arith.constant 0 : i32
    %c0_i32_0 = arith.constant 0 : i32
    %c0_i32_1 = arith.constant 0 : i32
    return %arg1, %c0_i32, %c0_i32_0 : i32, i32, i32
  }
  func.func @transform_9(%arg0: i32, %arg1: i32) -> (i32, i32, i32) {
    %c0_i32 = arith.constant 0 : i32
    %c0_i32_0 = arith.constant 0 : i32
    %c0_i32_1 = arith.constant 0 : i32
    return %arg1, %c0_i32, %c0_i32_0 : i32, i32, i32
  }
  func.func @transform_10(%arg0: i32, %arg1: i32) -> (i32, i32, i32) {
    %c0_i32 = arith.constant 0 : i32
    %c0_i32_0 = arith.constant 0 : i32
    %c0_i32_1 = arith.constant 0 : i32
    return %arg1, %c0_i32, %c0_i32_0 : i32, i32, i32
  }
  func.func @transform_11(%arg0: i32, %arg1: i32) -> (i32, i32, i32) {
    %c0_i32 = arith.constant 0 : i32
    %c0_i32_0 = arith.constant 0 : i32
    %c0_i32_1 = arith.constant 0 : i32
    return %arg1, %c0_i32, %c0_i32_0 : i32, i32, i32
  }
  func.func @transform_12(%arg0: i32, %arg1: i32) -> (i32, i32, i32) {
    %c0_i32 = arith.constant 0 : i32
    %c0_i32_0 = arith.constant 0 : i32
    %c0_i32_1 = arith.constant 0 : i32
    return %arg1, %c0_i32, %c0_i32_0 : i32, i32, i32
  }
  func.func @transform_13(%arg0: i32, %arg1: i32) -> (i32, i32, i32) {
    %c0_i32 = arith.constant 0 : i32
    %c0_i32_0 = arith.constant 0 : i32
    %c0_i32_1 = arith.constant 0 : i32
    return %arg1, %c0_i32, %c0_i32_0 : i32, i32, i32
  }
  func.func @transform_14(%arg0: i32, %arg1: i32) -> (i32, i32, i32) {
    %c0_i32 = arith.constant 0 : i32
    %c0_i32_0 = arith.constant 0 : i32
    %c0_i32_1 = arith.constant 0 : i32
    return %arg1, %c0_i32, %c0_i32_0 : i32, i32, i32
  }
  func.func @transform_15(%arg0: i32, %arg1: i32) -> (i32, i32, i32) {
    %c0_i32 = arith.constant 0 : i32
    %c0_i32_0 = arith.constant 0 : i32
    %c0_i32_1 = arith.constant 0 : i32
    return %arg1, %c0_i32, %c0_i32_0 : i32, i32, i32
  }
  func.func @transform_16(%arg0: i32, %arg1: i32) -> (i32, i32, i32) {
    %c0_i32 = arith.constant 0 : i32
    %c0_i32_0 = arith.constant 0 : i32
    %c0_i32_1 = arith.constant 0 : i32
    return %arg0, %c0_i32, %c0_i32_0 : i32, i32, i32
  }
}

</mosaic_0001>

<bundles_post_ra>
// kernel: _lambda_.1
= control target key start
LH: loop header
LB: loop body
LE: loop exit
PB: predicated region body
PF: predicated region fallthrough
CT: control target
= control target key end

     0   :  { %s2671_s0 = inlined_call_operand.vmem [shape: f32[2,8,32], index: 0, kind: input, shape index: {}]   ;;  %s2672_s1 = inlined_call_operand.vmem [shape: f32[2,1,8], index: 1, kind: input, shape index: {}]   ;;  %s2673_s2 = inlined_call_operand.vmem [shape: f32[1,32], index: 2, kind: input, shape index: {}]   ;;  %s2674_s3 = inlined_call_operand.vmem [shape: f32[1,32], index: 3, kind: input, shape index: {}]   ;;  %s2675_s4 = inlined_call_operand.vmem [shape: bf16[2,32,96], index: 4, kind: input, shape index: {}]   ;;  %s2676_s5 = inlined_call_operand.vmem [shape: f32[2,1,96], index: 5, kind: input, shape index: {}]   ;;  %s2677_s6 = inlined_call_operand.vmem [shape: bf16[2,32,32], index: 6, kind: input, shape index: {}]   ;;  %s2678_s7 = inlined_call_operand.vmem [shape: f32[2,1,32], index: 7, kind: input, shape index: {}]   ;;  %s2679_s8 = inlined_call_operand.vmem [shape: f32[2,1,32], index: 8, kind: input, shape index: {}]   ;;  %s2680_s9 = inlined_call_operand.vmem [shape: f32[2,1,32], index: 9, kind: input, shape index: {}]   ;;  %s2681_s10 = inlined_call_operand.vmem [shape: bf16[2,32,64], index: 10, kind: input, shape index: {}]   ;;  %s2682_s11 = inlined_call_operand.vmem [shape: f32[2,1,64], index: 11, kind: input, shape index: {}]   ;;  %s2683_s12 = inlined_call_operand.vmem [shape: bf16[2,64,32], index: 12, kind: input, shape index: {}]   ;;  %s2684_s13 = inlined_call_operand.vmem [shape: f32[2,1,32], index: 13, kind: input, shape index: {}]   ;;  %s2685_s14 = inlined_call_operand.vmem [shape: f32[2,1,32], index: 14, kind: input, shape index: {}]   ;;  %s2686_s15 = inlined_call_operand.vmem [shape: f32[2,1,32], index: 15, kind: input, shape index: {}]   ;;  %s2687_s16 = inlined_call_operand.hbm [shape: f32[2,1,32], index: 16, kind: output, shape index: {}]  }
   0x1   :  { %2701 = sst [smem:[#allocation19_spill]] %s2671_s0 }
   0x2   :  { %2702 = sst [smem:[#allocation20_spill]] %s2672_s1 }
   0x3   :  { %2703 = sst [smem:[#allocation21_spill]] %s2673_s2 }
   0x4   :  { %2704 = sst [smem:[#allocation22_spill]] %s2674_s3 }
   0x5   :  { %2705 = sst [smem:[#allocation23_spill]] %s2675_s4 }
   0x6   :  { %2706 = sst [smem:[#allocation24_spill]] %s2677_s6 }
   0x7   :  { %2707 = sst [smem:[#allocation25_spill]] %s2680_s9 }
   0x8   :  { %2708 = sst [smem:[#allocation26_spill]] %s2681_s10 }
   0x9   :  { %2709 = sst [smem:[#allocation27_spill]] %s2685_s14 }
   0xa   :  { %2710 = sst [smem:[#allocation28_spill]] %s2686_s15 }
   0xb   :  { %2711 = sst [smem:[#allocation29_spill]] %s2687_s16 }
   0xc   :  { %21 = vsyncpa [#allocation5], 0 }
   0xd   :  { %23 = vsyncpa [#allocation5 + $0x1], 0  ;;  %s2315_s21 = smov 0   ;;  %s2317_s22 = smov 0  }
   0xe   :  { %s2319_s23 = smov 0   ;;  %s2321_s24 = smov 0  }
   0xf   :  { %s2323_s25 = smov 0   ;;  %s2325_s26 = smov 0  }
  0x10   :  { %s2327_s27 = smov 0   ;;  %s2329_s28 = smov 0  }
  0x11 LB: > { %2712 = sst [smem:[#allocation7_spill]] %s2183_s21  ;;  %s1827_s29 = sadd.s32 4294967295, %s2211_s28   ;;  %s2211_s28 = sphi %s2329_s28, %s29_s28   ;;  %s2207_s27 = sphi %s2327_s27, %s2761_s27   ;;  %s2203_s26 = sphi %s2325_s26, %s2760_s26   ;;  %s2199_s25 = sphi %s2323_s25, %s2759_s25   ;;  %s2195_s24 = sphi %s2321_s24, %s2758_s24   ;;  %s2191_s23 = sphi %s2319_s23, %s2757_s23   ;;  %s2187_s22 = sphi %s2317_s22, %s2763_s22   ;;  %s2183_s21 = sphi %s2315_s21, %s2762_s21  }
  0x12   : > { %2713 = sst [smem:[#allocation8_spill]] %s2191_s23  ;;  %s1828_s30 = sadd.s32 4294967294, %s2211_s28  }
  0x13   : > { %2714 = sst [smem:[#allocation9_spill]] %s2195_s24  ;;  %s38_s0 = sadd.s32 1, %s2203_s26 }
  0x14   : > { %2715 = sst [smem:[#allocation10_spill]] %s2199_s25  ;;  %p39_p0 = scmp.ge.s32.totalorder %s38_s0, 2 }
  0x15   : > { %2716 = sst [smem:[#allocation11_spill]] %s2203_s26  ;;  %s41_s17 = sadd.s32 1, %s2207_s27 }
  0x16   : > { %2717 = sst [smem:[#allocation12_spill]] %s2207_s27  ;;  %p464_p1 = scmp.ne.s32.totalorder %s2191_s23, %s2187_s22 }
  0x17   : > { %2718 = sst [smem:[#allocation13_spill]] %s2211_s28  ;;  %p465_p2 = scmp.eq.s32.totalorder %s1827_s29, 3 }
  0x18   : > { %s2765_s0 = smov (%p39_p0, %s38_s0), 0  ;;  %s2767_s17 = smov (!%p39_p0, %s41_s17), %s2207_s27 }
  0x19   : > { %2719 = sst [smem:[#allocation14_spill]] %s2765_s0  ;;  %p2364_p3 = por %p465_p2, %p464_p1 }
  0x1a   : > { %p470_p4 = scmp.ne.s32.totalorder %s2187_s22, %s2183_s21  ;;  %p43_p5 = scmp.ge.s32.totalorder %s2767_s17, 2 }
  0x1b   : > { %s2720_s18 = scalar_select %p2364_p3, 1, 0 }
  0x1c   : > { %p471_p6 = scmp.eq.s32.totalorder %s1828_s30, 3  ;;  %p1831_p7 = scmp.ge.s32.totalorder %s2211_s28, 1 }
  0x1d   : > { %2721 = sst [smem:[#allocation15_spill]] %s2720_s18  ;;  %p588_p8 = scmp.lt.s32.totalorder %s2211_s28, 5 }
  0x1e   : > { %s2769_s17 = smov (%p43_p5, %s2767_s17), 0  ;;  %p2374_p9 = por %p471_p6, %p470_p4 }
  0x1f   : > { %2722 = sst [smem:[#allocation16_spill]] %s2769_s17  ;;  %p589_p10 = pnand %p1831_p7, %p588_p8 }
  0x20   : > { %s2723_s19 = scalar_select %p2374_p9, 1, 0 }
  0x21   : > { %s451_s20 = ssub.s32 %s2207_s27, %s2769_s17  ;;  %s454_s29 = sadd.s32 1, %s2191_s23 }
  0x22   : > { %2724 = sst [smem:[#allocation17_spill]] %s2723_s19  ;;  %p452_p11 = scmp.eq.s32.totalorder %s451_s20, 0 }
  0x23   : > { %592 = sbr.rel (%p589_p10) target bundleno = 2987 (0xbab), region = 84  ;;  %p683_p12 = scmp.lt.s32.totalorder (!%p589_p10), %s2199_s25, 1 }
  0x24   : > { %s2382_s0 = scalar_select %p452_p11, %s2191_s23, %s454_s29  }
  0x25   : > { %p690_p13 = scmp.lt.s32.totalorder (!%p589_p10), %s2195_s24, 1  ;;  %s2727_s23 = sld [smem:[#allocation19_spill]] (!%p589_p10) }
  0x26   : > { %2725 = sst [smem:[#allocation18_spill]] %s2382_s0  ;;  %s2728_s4 = sld [smem:[#allocation23_spill]] (!%p589_p10) }
  0x27   : > { %s2729_s6 = sld [smem:[#allocation24_spill]] (!%p589_p10)  ;;  %s2731_s10 = sld [smem:[#allocation26_spill]] (!%p589_p10) }
  0x28   : > { %s2734_s14 = sand.u32 (!%p589_p10), 1, %s2187_s22  }
  0x29   : > { %s2457_s15 = scalar_lea.vmem (!%p589_p10), [#allocation4], %s2734_s14 }
  0x2a   : > { %s2388_s26 = scalar_select %p683_p12, %s2199_s25, 1 }
  0x2b   : > { %s2391_s19 = scalar_select %p690_p13, %s2195_s24, 1 }
  0x2c   : > { %s1832_s20 = sshll.u32 %s2388_s26, 3  ;;  %s2735_s24 = sld [smem:[#allocation9_spill]] }
  0x2d   : > { %s686_s21 = scalar_lea.vmem %s2727_s23, %s1832_s20  ;;  %s1878_s28 = sshll.u32 %s2391_s19, 4 }
  0x2e   : > { %s2405_s25 = scalar_lea.vmem %s2728_s4, %s1878_s28  ;;  %s2414_s30 = scalar_lea.vmem %s2729_s6, %s1878_s28 }
  0x2f   : > { %s2431_s3 = scalar_lea.vmem %s2731_s10, %s1878_s28  ;;  %s1881_s6 = sshll.u32 %s2391_s19, 5 }
  0x30   : > { %s727_s27 = scalar_lea.vmem %s2684_s13, %s2391_s19  ;;  %s2445_s20 = scalar_lea.vmem %s2683_s12, %s1881_s6 }
  0x31   : > { %s2732_s4 = sld [smem:[#allocation27_spill]]  ;;  %s2733_s10 = sld [smem:[#allocation28_spill]] }
  0x32   : > { %p1841_p0 = scmp.ne.s32.totalorder %s2735_s24, 0 }
  0x33   : > { %v739_v0 = vld [vmem:[%s686_s21] sm:$0xff] (!%p1841_p0)  ;;  %vm742_vm0 = vcmask (!%p1841_p0), 261120   ;;  %s2737_s17 = sld [smem:[#allocation22_spill]] (!%p1841_p0) }
  0x34   : > { %738 = sbr.rel (%p1841_p0) target bundleno = 366 (0x16e), region = 88  ;;  %v743_v1 = vsel (!%p1841_p0), %vm742_vm0, %v739_v0, 0.0 }
  0x35   : > { %744 = vadd.xlane.f32.xlu0 (!%p1841_p0), %v743_v1 }
  0x37   : > { %s730_s1 = scalar_lea.vmem %s2732_s4, %s2391_s19  ;;  %s733_s9 = scalar_lea.vmem %s2733_s10, %s2391_s19 }
  0x38   : > { %s2736_s10 = sld [smem:[#allocation21_spill]] (!%p1841_p0) }
  0x39   : > { %v1843_v13 = vld [vmem:[%s2737_s17] ss:$0 sm:$0xff] (!%p1841_p0) }
  0x3e   : > { %v1842_v11 = vld [vmem:[%s2736_s10] ss:$0 sm:$0xff] }
  0xc2   : > { %v745_v2 = vpop.xlane.xlu0 %744 }
  0xc3   : > { %v747_v3 = vmul.f32 0.03125, %v745_v2 }
  0xc5   : > { %v748_v4 = vsub.f32 %v739_v0, %v747_v3 }
  0xc7   : > { %v749_v5 = vmul.f32 %v748_v4, %v748_v4 }
  0xc9   : > { %v750_v6 = vsel %vm742_vm0, %v749_v5, 0.0 }
  0xca   : > { %751 = vadd.xlane.f32.xlu0 %v750_v6 }
 0x157   : > { %v752_v7 = vpop.xlane.xlu0 %751 }
 0x158   : > { %v753_v8 = vmul.f32 0.03125, %v752_v7 }
 0x15a   : > { %v754_v9 = vadd.f32 1e-12, %v753_v8 }
 0x15c   : > { %2083 = vrsqrt.f32 %v754_v9 }
 0x166   : > { %v2084_v10 = vpop.eup %2083 }
 0x167   : > { %v756_v12 = vmul.f32 %v2084_v10, %v748_v4 }
 0x169   : > { %v763_v14 = vmul.f32 %v1842_v11, %v756_v12 }
 0x16b   : > { %v770_v15 = vadd.f32 %v1843_v13, %v763_v14 }
 0x16d   : > { %771 = vst.msk [vmem:[#allocation2] sm:$0xff] %vm742_vm0, %v770_v15 }
 0x16e PF: > { %v2085_v16 = vld [vmem:[%s2405_s25] sm:$0xff]   ;;  %v2213_v17 = vmov 0.0   ;;  %v2086_v18 = vld [vmem:[%s2405_s25 + $0x8] sm:$0xff]   ;;  %vm2214_vm1 = vmmov 0   ;;  %vm800_vm2 = vcmask 261120   ;;  %s2738_s23 = scalar_lea.vmem %s2676_s5, %s2391_s19  ;;  %s2215_s0 = smov 96   ;;  %v848_v41 = vlaneseq }
 0x16f   : > { %1912 = vmatprep.subr.bf16.mxu0 %v2213_v17  ;;  %1920 = vmatprep.subr.bf16.mxu1 %v2213_v17  ;;  %v1844_v21 = vld [vmem:[%s2738_s23] ss:$0 sm:$0xff]  ;;  %s2216_s16 = smov 120   ;;  %s2217_s18 = smov 88   ;;  %vm856_vm3 = vcmask 64512   ;;  %vm920_vm4 = vcmask 1043456  }
 0x170   : > { %1913 = vmatpush3.bf16.msra.mxu0 %v2085_v16  ;;  %1916 = vmatprep.mubr.msk.bf16.mxu0 %vm2214_vm1, %v2213_v17  ;;  %s2218_s28 = smov 80   ;;  %s2219_s2 = smov 112   ;;  %v849_v44 = vshrl.u32 %v848_v41, 7  ;;  %vm1080_vm5 = vcmask 130112   ;;  %vm1196_vm6 = vcmask 195712   ;;  %vm1312_vm7 = vcmask 261312  }
 0x171   : > { %1914 = vmatprep.subr.bf16.mxu0 %v2213_v17  ;;  %1922 = vmatprep.mubr.msk.bf16.mxu1 %vm2214_vm1, %v2213_v17  ;;  %s2220_s14 = smov 72   ;;  %s2221_s4 = smov 104   ;;  %vm1529_vm8 = vcmask 523264  }
 0x172   : > { %s2739_s21 = sld [smem:[#allocation20_spill]]  ;;  %v850_v46 = vsub.s32 0, %v849_v44  ;;  %s2223_s17 = smov 64  }
 0x173   : > { %s2224_s25 = smov 40   ;;  %s2225_s29 = smov 48  }
 0x174   : > { %v2475_v19 = vld [vmem:[#allocation2] sm:$0xff]  ;;  %1915 = vmatpush3.bf16.msra.mxu0 %v2086_v18  ;;  %s2226_s23 = smov 8  }
 0x175   : > { %v776_v20 = vpack.c.bf16 %v2475_v19, %v2475_v19  ;;  %1926 = vmatprep.subr.bf16.mxu0 %v2213_v17 }
 0x177   : > { %1917 = vmatmul.mubr.msk.bf16.vlgmr.msra.gmra.mrb[0].mxu0 %vm800_vm2, %v776_v20 }
 0x178   : > { %1928 = vmatprep.mubr.msk.bf16.mxu0 %vm2214_vm1, %v2213_v17  ;;  %s2740_s24 = scalar_lea.vmem %s2739_s21, %s2388_s26  ;;  %s2222_s26 = smov 56  }
 0x179   : > { %v773_v42 = vld [vmem:[%s2740_s24] sm:$0x1]  ;;  %s2743_s21 = sld [smem:[#allocation25_spill]] }
 0x17a   : > { %v774_v43 = vsub.f32 1.0, %v773_v42 }
 0x17c   : > { %v775_v45 = vmul.f32 -1e+09, %v774_v43 }
 0x17e   : > { %v851_v47 = vrot.slane %v775_v45, %v850_v46 }
 0x17f   : > { %s2744_s24 = scalar_lea.vmem %s2743_s21, %s2391_s19 }
 0x24a   : > { %v838_v22 = vpop.f32.mrb[0].mxu0 }
 0x24b   : > { %v839_v23 = vadd.f32 %v1844_v21, %v838_v22  ;;  %v1918_v24 = vpop.f32.mrb[1].mxu0 }
 0x24c   : > { %v841_v25 = vpop.f32.mrb[2].mxu0 }
 0x24d   : > { %v844_v26 = vmul.f32 0.35355338, %v839_v23  ;;  %v2491_v27 = vpack.c.bf16 %v839_v23, %v839_v23  ;;  %v1919_v28 = vpop.f32.mrb[3].mxu0 }
 0x24f   : > { %v845_v29 = vpack.c.bf16 %v844_v26, %v844_v26  ;;  %854 = vrot.lane.b32.xlu0 %v2491_v27, %s2215_s0  ;;  %s2227_s0 = smov 16  }
 0x251   : > { %966 = vrot.lane.b32.xlu1 %v845_v29, %s2216_s16  ;;  %s2228_s16 = smov 24  }
 0x253   : > { %968 = vrot.lane.b32.xlu0 %v2491_v27, %s2217_s18  ;;  %s2748_s18 = sld [smem:[#allocation9_spill]] }
 0x255   : > { %1084 = vrot.lane.b32.xlu1 %v2491_v27, %s2218_s28  ;;  %s2741_s28 = scalar_lea.vmem %s2678_s7, %s2391_s19 }
 0x257   : > { %1082 = vrot.lane.b32.xlu0 %v845_v29, %s2219_s2 }
 0x259   : > { %1200 = vrot.lane.b32.xlu1 %v2491_v27, %s2220_s14  ;;  %p1874_p1 = scmp.ne.s32.totalorder %s2748_s18, 1 }
 0x25a   : > { %vm1617_vm9 = vcmask (!%p1874_p1), 253952  }
 0x25b   : > { %1198 = vrot.lane.b32.xlu0 %v845_v29, %s2221_s4  ;;  %s2742_s4 = scalar_lea.vmem %s2679_s8, %s2391_s19 }
 0x2c1   : > { %v855_v30 = vpop.permute.xlu0 %854 }
 0x2c2   : > { %v861_v31 = vsel %vm856_vm3, %v855_v30, 0 }
 0x2c3   : > { %1921 = vmatpush3.bf16.xpose.msra.mxu1 %v861_v31  ;;  %v967_v33 = vpop.permute.xlu1 %966 }
 0x2c4   : > { %1932 = vmatprep.subr.bf16.mxu1 %v2213_v17 }
 0x2c5   : > { %v969_v32 = vpop.permute.xlu0 %968 }
 0x2c6   : > { %v974_v34 = vsel %vm856_vm3, %v969_v32, 0 }
 0x2c7   : > { %v1085_v35 = vpop.permute.xlu1 %1084 }
 0x2c8   : > { %v1090_v36 = vsel %vm856_vm3, %v1085_v35, 0 }
 0x2c9   : > { %v1083_v38 = vpop.permute.xlu0 %1082 }
 0x2ca   : > { %1923 = vmatmul.mubr.msk.bf16.vlgmr.msra.gmra.mrb[0].mxu1 %vm856_vm3, %v845_v29 }
 0x2cb   : > { %1933 = vmatpush3.bf16.xpose.msra.mxu1 %v974_v34  ;;  %1934 = vmatprep.mubr.msk.bf16.mxu1 %vm2214_vm1, %v2213_v17  ;;  %v1201_v37 = vpop.permute.xlu1 %1200 }
 0x2cc   : > { %1944 = vmatprep.subr.bf16.mxu1 %v2213_v17  ;;  %v1206_v39 = vsel %vm856_vm3, %v1201_v37, 0 }
 0x2cd   : > { %v1199_v40 = vpop.permute.xlu0 %1198 }
 0x2d2   : > { %1935 = vmatmul.mubr.msk.bf16.vlgmr.msra.gmra.mrb[4].mxu1 %vm856_vm3, %v967_v33 }
 0x2d3   : > { %1945 = vmatpush3.bf16.xpose.msra.mxu1 %v1090_v36  ;;  %1946 = vmatprep.mubr.msk.bf16.mxu1 %vm2214_vm1, %v2213_v17 }
 0x2d4   : > { %1956 = vmatprep.subr.bf16.mxu1 %v2213_v17 }
 0x2da   : > { %1947 = vmatmul.mubr.msk.bf16.vlgmr.msra.gmra.mrb[8].mxu1 %vm856_vm3, %v1083_v38 }
 0x2db   : > { %1957 = vmatpush3.bf16.xpose.msra.mxu1 %v1206_v39  ;;  %1958 = vmatprep.mubr.msk.bf16.mxu1 %vm2214_vm1, %v2213_v17 }
 0x2dc   : > { %1968 = vmatprep.subr.bf16.mxu1 %v2213_v17 }
 0x2e2   : > { %1959 = vmatmul.mubr.msk.bf16.vlgmr.msra.gmra.mrb[12].mxu1 %vm856_vm3, %v1199_v40 }
 0x2e3   : > { %1972 = vmatprep.mubr.msk.bf16.mxu1 %vm2214_vm1, %v2213_v17 }
 0x39d   : > { %v897_v48 = vpop.f32.mrb[0].mxu1 }
 0x39e   : > { %v898_v49 = vadd.f32 %v897_v48, %v851_v47  ;;  %v1924_v50 = vpop.f32.mrb[1].mxu1 }
 0x39f   : > { %v900_v51 = vpop.f32.mrb[2].mxu1 }
 0x3a0   : > { %v1925_v52 = vpop.f32.mrb[3].mxu1  ;;  %v903_v53 = vsel %vm856_vm3, %v898_v49, -inf }
 0x3a1   : > { %904 = vmax.xlane.f32.xlu1 %v903_v53 }
 0x3a5   : > { %v1010_v54 = vpop.f32.mrb[4].mxu1 }
 0x3a6   : > { %v1011_v55 = vadd.f32 %v1010_v54, %v851_v47  ;;  %v1936_v56 = vpop.f32.mrb[5].mxu1 }
 0x3a7   : > { %v1013_v57 = vpop.f32.mrb[6].mxu1 }
 0x3a8   : > { %v1937_v58 = vpop.f32.mrb[7].mxu1  ;;  %v1016_v59 = vsel %vm856_vm3, %v1011_v55, -inf }
 0x3a9   : > { %1017 = vmax.xlane.f32.xlu0 %v1016_v59 }
 0x3ad   : > { %v1126_v60 = vpop.f32.mrb[8].mxu1 }
 0x3ae   : > { %v1127_v61 = vadd.f32 %v1126_v60, %v851_v47  ;;  %v1948_v62 = vpop.f32.mrb[9].mxu1 }
 0x3af   : > { %v1129_v63 = vpop.f32.mrb[10].mxu1  ;;  %v2087_v62 = vld [vmem:[%s2414_s30] sm:$0xff]  }
 0x3b0   : > { %v1949_v0 = vpop.f32.mrb[11].mxu1  ;;  %v1132_v1 = vsel %vm856_vm3, %v1127_v61, -inf  ;;  %1969 = vmatpush3.bf16.msra.mxu1 %v2087_v62  ;;  %v2088_v63 = vld [vmem:[%s2414_s30 + $0x8] sm:$0xff]  }
 0x3b1   : > { %1133 = vmax.xlane.f32.xlu0 %v1132_v1  ;;  %1970 = vmatprep.subr.bf16.mxu1 %v2213_v17 }
 0x3b4   : > { %1971 = vmatpush3.bf16.msra.mxu1 %v2088_v63 }
 0x3b5   : > { %v1242_v2 = vpop.f32.mrb[12].mxu1  ;;  %1984 = vmatprep.subr.bf16.mxu1 %v2213_v17 }
 0x3b6   : > { %v1243_v3 = vadd.f32 %v1242_v2, %v851_v47  ;;  %v1960_v4 = vpop.f32.mrb[13].mxu1 }
 0x3b7   : > { %v1245_v5 = vpop.f32.mrb[14].mxu1 }
 0x3b8   : > { %v1961_v6 = vpop.f32.mrb[15].mxu1  ;;  %v1248_v7 = vsel %vm856_vm3, %v1243_v3, -inf }
 0x3b9   : > { %1249 = vmax.xlane.f32.xlu1 %v1248_v7 }
 0x42e   : > { %v905_v8 = vpop.xlane.xlu1 %904 }
 0x42f   : > { %v906_v9 = vsub.f32 %v898_v49, %v905_v8 }
 0x431   : > { %v907_v10 = vmul.f32 1.442695, %v906_v9 }
 0x433   : > { %2095 = vpow2.f32 %v907_v10 }
 0x436   : > { %v1018_v11 = vpop.xlane.xlu0 %1017 }
 0x437   : > { %v1019_v12 = vsub.f32 %v1011_v55, %v1018_v11 }
 0x439   : > { %v1020_v13 = vmul.f32 1.442695, %v1019_v12 }
 0x43b   : > { %2097 = vpow2.f32 %v1020_v13  ;;  %v1856_v13 = vld [vmem:[%s2741_s28] ss:$0 sm:$0xff] }
 0x43d   : > { %v2096_v14 = vpop.eup %2095 }
 0x43e   : > { %v1134_v15 = vpop.xlane.xlu0 %1133  ;;  %v909_v16 = vsel %vm856_vm3, %v2096_v14, 0.0 }
 0x43f   : > { %v1135_v18 = vsub.f32 %v1127_v61, %v1134_v15  ;;  %910 = vadd.xlane.f32.xlu0 %v909_v16 }
 0x441   : > { %v1136_v20 = vmul.f32 1.442695, %v1135_v18 }
 0x443   : > { %2099 = vpow2.f32 %v1136_v20 }
 0x445   : > { %v2098_v21 = vpop.eup %2097 }
 0x446   : > { %v1022_v22 = vsel %vm856_vm3, %v2098_v21, 0.0  ;;  %v1250_v25 = vpop.xlane.xlu1 %1249 }
 0x447   : > { %1023 = vadd.xlane.f32.xlu1 %v1022_v22  ;;  %v1251_v26 = vsub.f32 %v1243_v3, %v1250_v25 }
 0x449   : > { %v1252_v28 = vmul.f32 1.442695, %v1251_v26 }
 0x44b   : > { %2101 = vpow2.f32 %v1252_v28 }
 0x44d   : > { %v2100_v23 = vpop.eup %2099 }
 0x44e   : > { %v1138_v24 = vsel %vm856_vm3, %v2100_v23, 0.0 }
 0x44f   : > { %1139 = vadd.xlane.f32.xlu0 %v1138_v24 }
 0x455   : > { %v2102_v29 = vpop.eup %2101 }
 0x456   : > { %v1254_v30 = vsel %vm856_vm3, %v2102_v29, 0.0 }
 0x458   : > { %1028 = vrot.lane.b32.xlu1 %v2491_v27, %s2222_s26 }
 0x465   : > { %915 = vrot.lane.b32.xlu0 %v2491_v27, %s2223_s17  ;;  %s2745_s17 = scalar_lea.vmem %s2682_s11, %s2391_s19 }
 0x469   : > { %1260 = vrot.lane.b32.xlu0 %v2491_v27, %s2224_s25 }
 0x47c   : > { %1255 = vadd.xlane.f32.xlu1 %v1254_v30  ;;  %v2090_v30 = vld [vmem:[%s2431_s3 + $0x8] sm:$0xff]  }
 0x48d   : > { %1144 = vrot.lane.b32.xlu1 %v2491_v27, %s2225_s29 }
 0x4cc   : > { %v911_v31 = vpop.xlane.xlu0 %910 }
 0x4cd   : > { %2103 = vrcp.f32 %v911_v31 }
 0x4d4   : > { %v1024_v32 = vpop.xlane.xlu1 %1023 }
 0x4d5   : > { %2105 = vrcp.f32 %v1024_v32 }
 0x4d7   : > { %v2104_v33 = vpop.eup %2103 }
 0x4d8   : > { %v913_v35 = vmul.f32 %v2104_v33, %v2096_v14  ;;  %v1029_v38 = vpop.permute.xlu1 %1028 }
 0x4d9   : > { %v1034_v41 = vsel %vm920_vm4, %v1029_v38, 0 }
 0x4da   : > { %v914_v39 = vpack.c.bf16 %v913_v35, %v913_v35 }
 0x4dc   : > { %v1140_v34 = vpop.xlane.xlu0 %1139 }
 0x4dd   : > { %2107 = vrcp.f32 %v1140_v34  ;;  %v1860_v34 = vld [vmem:[%s2742_s4] ss:$0 sm:$0xff] }
 0x4df   : > { %v2106_v40 = vpop.eup %2105 }
 0x4e0   : > { %v916_v36 = vpop.permute.xlu0 %915  ;;  %v1026_v27 = vmul.f32 %v2106_v40, %v2098_v21  ;;  %v2091_v40 = vld [vmem:[%s2445_s20] sm:$0xff]  }
 0x4e1   : > { %v922_v37 = vsel %vm920_vm4, %v916_v36, 0  ;;  %v1861_v36 = vld [vmem:[%s2744_s24] ss:$0 sm:$0xff] }
 0x4e2   : > { %1927 = vmatpush3.bf16.msra.mxu0 %v922_v37  ;;  %v1027_v42 = vpack.c.bf16 %v1026_v27, %v1026_v27  ;;  %v2093_v27 = vld [vmem:[%s2445_s20 + $0x10] sm:$0xff]  }
 0x4e3   : > { %1938 = vmatprep.subr.bf16.mxu0 %v2213_v17 }
 0x4e4   : > { %v1261_v48 = vpop.permute.xlu0 %1260 }
 0x4e5   : > { %1929 = vmatmul.mubr.msk.bf16.vlgmr.msra.gmra.mrb[4].mxu0 %vm856_vm3, %v914_v39  ;;  %v1266_v50 = vsel %vm920_vm4, %v1261_v48, 0 }
 0x4e6   : > { %1939 = vmatpush3.bf16.msra.mxu0 %v1034_v41  ;;  %1940 = vmatprep.mubr.msk.bf16.mxu0 %vm2214_vm1, %v2213_v17  ;;  %v2092_v41 = vld [vmem:[%s2445_s20 + $0x8] sm:$0xff]  }
 0x4e7   : > { %1950 = vmatprep.subr.bf16.mxu0 %v2213_v17  ;;  %v2108_v43 = vpop.eup %2107 }
 0x4e8   : > { %v1142_v45 = vmul.f32 %v2108_v43, %v2100_v23  ;;  %v1862_v43 = vld [vmem:[%s2745_s17] ss:$0 sm:$0xff] }
 0x4ea   : > { %v1143_v49 = vpack.c.bf16 %v1142_v45, %v1142_v45 }
 0x4ed   : > { %1941 = vmatmul.mubr.msk.bf16.vlgmr.msra.gmra.mrb[8].mxu0 %vm856_vm3, %v1027_v42  ;;  %v2094_v42 = vld [vmem:[%s2445_s20 + $0x18] sm:$0xff]  }
 0x4ee   : > { %1952 = vmatprep.mubr.msk.bf16.mxu0 %vm2214_vm1, %v2213_v17 }
 0x509   : > { %v1256_v44 = vpop.xlane.xlu1 %1255 }
 0x50a   : > { %2109 = vrcp.f32 %v1256_v44 }
 0x50d   : > { %v1145_v46 = vpop.permute.xlu1 %1144 }
 0x50e   : > { %v1150_v47 = vsel %vm920_vm4, %v1145_v46, 0 }
 0x50f   : > { %1951 = vmatpush3.bf16.msra.mxu0 %v1150_v47 }
 0x510   : > { %1962 = vmatprep.subr.bf16.mxu0 %v2213_v17 }
 0x512   : > { %1953 = vmatmul.mubr.msk.bf16.vlgmr.msra.gmra.mrb[12].mxu0 %vm856_vm3, %v1143_v49 }
 0x513   : > { %1963 = vmatpush3.bf16.msra.mxu0 %v1266_v50  ;;  %1964 = vmatprep.mubr.msk.bf16.mxu0 %vm2214_vm1, %v2213_v17 }
 0x514   : > { %v2110_v51 = vpop.eup %2109  ;;  %1976 = vmatprep.subr.bf16.mxu0 %v2213_v17 }
 0x515   : > { %v1258_v52 = vmul.f32 %v2110_v51, %v2102_v29  ;;  %v2089_v29 = vld [vmem:[%s2431_s3] sm:$0xff]  }
 0x517   : > { %v1259_v53 = vpack.c.bf16 %v1258_v52, %v1258_v52 }
 0x51a   : > { %1965 = vmatmul.mubr.msk.bf16.vlgmr.msra.gmra.mrb[16].mxu0 %vm856_vm3, %v1259_v53 }
 0x51b   : > { %1980 = vmatprep.mubr.msk.bf16.mxu0 %vm2214_vm1, %v2213_v17  ;;  %1977 = vmatpush3.bf16.msra.mxu0 %v2089_v29 }
 0x51c   : > { %1978 = vmatprep.subr.bf16.mxu0 %v2213_v17 }
 0x51f   : > { %1979 = vmatpush3.bf16.msra.mxu0 %v2090_v30 }
 0x5b8   : > { %v958_v54 = vpop.f32.mrb[4].mxu0 }
 0x5b9   : > { %964 = vst.msk [vmem:[#allocation3] sm:$0xff] %vm856_vm3, %v958_v54  ;;  %v1930_v55 = vpop.f32.mrb[5].mxu0 }
 0x5ba   : > { %v961_v56 = vpop.f32.mrb[6].mxu0 }
 0x5bb   : > { %v1931_v57 = vpop.f32.mrb[7].mxu0 }
 0x5c0   : > { %v1070_v58 = vpop.f32.mrb[8].mxu0 }
 0x5c1   : > { %1077 = vrot.lane.b32.xlu1 %v1070_v58, %s2226_s23  ;;  %v1942_v59 = vpop.f32.mrb[9].mxu0  ;;  %v1866_v58 = vld [vmem:[%s727_s27] ss:$0 sm:$0xff] }
 0x5c2   : > { %v1073_v60 = vpop.f32.mrb[10].mxu0 }
 0x5c3   : > { %v1943_v61 = vpop.f32.mrb[11].mxu0 }
 0x5e5   : > { %v1186_v0 = vpop.f32.mrb[12].mxu0 }
 0x5e6   : > { %1193 = vrot.lane.b32.xlu0 %v1186_v0, %s2227_s0  ;;  %v1954_v1 = vpop.f32.mrb[13].mxu0 }
 0x5e7   : > { %v1189_v2 = vpop.f32.mrb[14].mxu0 }
 0x5e8   : > { %v1955_v3 = vpop.f32.mrb[15].mxu0 }
 0x5ed   : > { %v1302_v4 = vpop.f32.mrb[16].mxu0 }
 0x5ee   : > { %1309 = vrot.lane.b32.xlu1 %v1302_v4, %s2228_s16  ;;  %v1966_v5 = vpop.f32.mrb[17].mxu0 }
 0x5ef   : > { %v1305_v6 = vpop.f32.mrb[18].mxu0 }
 0x5f0   : > { %v1967_v7 = vpop.f32.mrb[19].mxu0 }
 0x633   : > { %v1078_v8 = vpop.permute.xlu1 %1077 }
 0x634   : > { %1081 = vst.msk [vmem:[#allocation3] sm:$0xff] %vm1080_vm5, %v1078_v8 }
 0x658   : > { %v1194_v9 = vpop.permute.xlu0 %1193 }
 0x659   : > { %1197 = vst.msk [vmem:[#allocation3] sm:$0xff] %vm1196_vm6, %v1194_v9 }
 0x660   : > { %v1310_v10 = vpop.permute.xlu1 %1309 }
 0x661   : > { %1313 = vst.msk [vmem:[#allocation3] sm:$0xff] %vm1312_vm7, %v1310_v10 }
 0x668   : > { %v1314_v11 = vld [vmem:[#allocation3] sm:$0xff] }
 0x669   : > { %v1315_v12 = vpack.c.bf16 %v1314_v11, %v1314_v11  ;;  %v1872_v11 = vld [vmem:[%s730_s1] ss:$0 sm:$0xff] }
 0x66b   : > { %1973 = vmatmul.mubr.msk.bf16.vlgmr.msra.gmra.mrb[16].mxu1 %vm800_vm2, %v1315_v12 }
 0x66c   : > { %1992 = vmatprep.mubr.msk.bf16.mxu1 %vm2214_vm1, %v2213_v17  ;;  %1985 = vmatpush3.bf16.msra.mxu1 %v2091_v40 }
 0x66d   : > { %1986 = vmatprep.subr.bf16.mxu1 %v2213_v17 }
 0x670   : > { %1987 = vmatpush3.bf16.msra.mxu1 %v2092_v41 }
 0x671   : > { %1988 = vmatprep.subr.bf16.mxu1 %v2213_v17 }
 0x674   : > { %1989 = vmatpush3.bf16.msra.mxu1 %v2093_v27 }
 0x675   : > { %1990 = vmatprep.subr.bf16.mxu1 %v2213_v17 }
 0x678   : > { %1991 = vmatpush3.bf16.msra.mxu1 %v2094_v42 }
 0x73e   : > { %v1376_v14 = vpop.f32.mrb[16].mxu1 }
 0x73f   : > { %v1377_v15 = vadd.f32 %v1856_v13, %v1376_v14  ;;  %v1974_v16 = vpop.f32.mrb[17].mxu1  ;;  %v1873_v13 = vld [vmem:[%s733_s9] ss:$0 sm:$0xff] }
 0x740   : > { %v1379_v18 = vpop.f32.mrb[18].mxu1 }
 0x741   : > { %v1975_v20 = vpop.f32.mrb[19].mxu1  ;;  %v1382_v21 = vadd.f32 %v1377_v15, %v2475_v19 }
 0x743   : > { %v1385_v22 = vsel %vm800_vm2, %v1382_v21, 0.0 }
 0x744   : > { %1386 = vadd.xlane.f32.xlu0 %v1385_v22 }
 0x7d1   : > { %v1387_v23 = vpop.xlane.xlu0 %1386 }
 0x7d2   : > { %v1389_v24 = vmul.f32 0.03125, %v1387_v23 }
 0x7d4   : > { %v1390_v25 = vsub.f32 %v1382_v21, %v1389_v24 }
 0x7d6   : > { %v1391_v26 = vmul.f32 %v1390_v25, %v1390_v25 }
 0x7d8   : > { %v1392_v28 = vsel %vm800_vm2, %v1391_v26, 0.0 }
 0x7d9   : > { %1393 = vadd.xlane.f32.xlu1 %v1392_v28 }
 0x866   : > { %v1394_v19 = vpop.xlane.xlu1 %1393 }
 0x867   : > { %v1395_v31 = vmul.f32 0.03125, %v1394_v19 }
 0x869   : > { %v1396_v32 = vadd.f32 1e-12, %v1395_v31 }
 0x86b   : > { %2111 = vrsqrt.f32 %v1396_v32 }
 0x875   : > { %v2112_v33 = vpop.eup %2111 }
 0x876   : > { %v1398_v35 = vmul.f32 %v2112_v33, %v1390_v25 }
 0x878   : > { %v1405_v37 = vmul.f32 %v1860_v34, %v1398_v35 }
 0x87a   : > { %v1412_v38 = vadd.f32 %v1861_v36, %v1405_v37 }
 0x87c   : > { %v1413_v39 = vpack.c.bf16 %v1412_v38, %v1412_v38 }
 0x87e   : > { %1981 = vmatmul.mubr.msk.bf16.vlgmr.msra.gmra.mrb[20].mxu0 %vm800_vm2, %v1413_v39 }
 0x951   : > { %v1474_v44 = vpop.f32.mrb[20].mxu0 }
 0x952   : > { %v1475_v45 = vadd.f32 %v1862_v43, %v1474_v44  ;;  %v1982_v46 = vpop.f32.mrb[21].mxu0 }
 0x953   : > { %v1477_v47 = vpop.f32.mrb[22].mxu0 }
 0x954   : > { %v1481_v48 = vmul.f32 0.044715, %v1475_v45  ;;  %v1983_v49 = vpop.f32.mrb[23].mxu0  ;;  %v1480_v17 = vmul.f32 0.5, %v1475_v45 }
 0x956   : > { %v1482_v50 = vmul.f32 %v1481_v48, %v1475_v45 }
 0x958   : > { %v1483_v51 = vmul.f32 %v1482_v50, %v1475_v45 }
 0x95a   : > { %v1484_v52 = vadd.f32 %v1483_v51, %v1475_v45 }
 0x95c   : > { %v1485_v53 = vmul.f32 0.7978846, %v1484_v52 }
 0x95e   : > { %2113 = vtanh.f32 %v1485_v53 }
 0x968   : > { %v2114_v54 = vpop.eup %2113 }
 0x969   : > { %v1487_v55 = vadd.f32 1.0, %v2114_v54 }
 0x96b   : > { %v1488_v56 = vmul.f32 %v1487_v55, %v1480_v17 }
 0x96d   : > { %v1489_v57 = vpack.c.bf16 %v1488_v56, %v1488_v56 }
 0x96f   : > { %1993 = vmatmul.mubr.msk.bf16.vlgmr.msra.gmra.mrb[20].mxu1 %vm1529_vm8, %v1489_v57 }
 0xa42   : > { %v1567_v59 = vpop.f32.mrb[20].mxu1 }
 0xa43   : > { %v1568_v60 = vadd.f32 %v1866_v58, %v1567_v59  ;;  %v1994_v61 = vpop.f32.mrb[21].mxu1 }
 0xa44   : > { %v1570_v62 = vpop.f32.mrb[22].mxu1 }
 0xa45   : > { %v1995_v63 = vpop.f32.mrb[23].mxu1  ;;  %v1573_v0 = vadd.f32 %v1568_v60, %v1412_v38 }
 0xa47   : > { %v1576_v1 = vsel %vm800_vm2, %v1573_v0, 0.0 }
 0xa48   : > { %1577 = vadd.xlane.f32.xlu0 %v1576_v1 }
 0xad5   : > { %v1578_v2 = vpop.xlane.xlu0 %1577 }
 0xad6   : > { %v1579_v3 = vmul.f32 0.03125, %v1578_v2 }
 0xad8   : > { %v1580_v4 = vsub.f32 %v1573_v0, %v1579_v3 }
 0xada   : > { %v1581_v5 = vmul.f32 %v1580_v4, %v1580_v4 }
 0xadc   : > { %v1582_v6 = vsel %vm800_vm2, %v1581_v5, 0.0 }
 0xadd   : > { %1583 = vadd.xlane.f32.xlu0 %v1582_v6 }
 0xb6a   : > { %v1584_v7 = vpop.xlane.xlu0 %1583 }
 0xb6b   : > { %v1585_v8 = vmul.f32 0.03125, %v1584_v7 }
 0xb6d   : > { %v1586_v9 = vadd.f32 1e-12, %v1585_v8 }
 0xb6f   : > { %2115 = vrsqrt.f32 %v1586_v9 }
 0xb79   : > { %v2116_v10 = vpop.eup %2115 }
 0xb7a   : > { %v1588_v12 = vmul.f32 %v2116_v10, %v1580_v4  ;;  %1607 = sbr.rel (%p1874_p1) target bundleno = 2960 (0xb90), region = 92 }
 0xb7c   : > { %v1595_v14 = vmul.f32 %v1872_v11, %v1588_v12 }
 0xb7e   : > { %v1602_v15 = vadd.f32 %v1873_v13, %v1595_v14 }
 0xb80   : > { %1603 = vst.msk [vmem:[#allocation2] sm:$0xff] %vm800_vm2, %v1602_v15  ;;  %v1608_v16 = vsel (!%p1874_p1), %vm800_vm2, %v1602_v15, 0.0 }
 0xb81   : > { %v1609_v18 = vrot.slane %v1608_v16, 4 }
 0xb83   : > { %v1610_v20 = vadd.f32 %v1609_v18, %v1608_v16 }
 0xb85   : > { %v1611_v21 = vrot.slane %v1610_v20, 2 }
 0xb87   : > { %v1612_v22 = vadd.f32 %v1611_v21, %v1610_v20 }
 0xb89   : > { %v1613_v23 = vrot.slane %v1612_v22, 1 }
 0xb8b   : > { %v1614_v24 = vadd.f32 %v1613_v23, %v1612_v22 }
 0xb8d   : > { %v1616_v25 = vmul.f32 0.125, %v1614_v24 }
 0xb8f   : > { %1618 = vst.msk [vmem:[%s2457_s15] sm:$0x1] %vm1617_vm9, %v1616_v25 }
 0xb90 PF: > { %s2749_s9 = sld [smem:[#allocation10_spill]]  ;;  %s2751_s14 = sld [smem:[#allocation29_spill]] }
 0xb91   : > { %s1632_s6 = sshll.u32 %s2457_s15, 4  ;;  %s2752_s10 = sand.u32 1, %s2187_s22   ;;  %s1633_s6 = int_to_ptr.vmem [resolvable:$true] %s1632_s6 }
 0xb92   : > { %s1620_s21 = scalar_lea.sflag [#allocation5], %s2752_s10  ;;  %s2117_s24 = scalar_lea.vmem %s1633_s6, 16 }
 0xb93   : > { %p2118_p2 = scmp.ne.s32.totalorder %s1633_s6, %s2117_s24  ;;  %s2229_s3 = smov [#allocation4]  }
 0xb94   : > { %s2121_s26 = sshll.u32 %s2229_s3, 4  ;;  %s2122_s26 = int_to_ptr.vmem [resolvable:$false] %s2121_s26 }
 0xb95   : > { %p2119_p4 = pnand %p2118_p2, %p2364_p3  ;;  %s2123_s17 = scalar_lea.vmem %s2122_s26, 32 }
 0xb96   : > { %s1875_s1 = sshll.u32 %s2749_s9, 4  ;;  %p2124_p6 = scmp.lt.s32.totalorder %s1633_s6, %s2122_s26 }
 0xb97   : > { %s2621_s4 = scalar_lea.hbm %s2751_s14, %s1875_s1  ;;  %p2120_p5 = pneg %p2119_p4 }
 0xb98   : > { %p2125_p7 = scmp.lt.s32.totalorder %s2123_s17, %s2117_s24 }
 0xb9a   : > { %p2126_p8 = por %p2125_p7, %p2124_p6 }
 0xb9c   : > { %p2127_p10 = pnand %p2126_p8, %p2120_p5 }
 0xb9e   : > { %2130 = shalt.err (!%p2127_p10)
}
 0xb9f   : > { %s2131_s15 = scalar_lea.hbm %s2621_s4, 16  ;;  %s2135_s27 = scalar_lea.hbm %s2751_s14, 32 }
 0xba0   : > { %p2132_p11 = scmp.ne.s32.totalorder %s2621_s4, %s2131_s15  ;;  %p2136_p0 = scmp.lt.u32.totalorder %s2621_s4, %s2751_s14 }
 0xba1   : > { %p2137_p1 = scmp.lt.u32.totalorder %s2135_s27, %s2131_s15  ;;  %p2139_p4 = scmp.lt.u32.totalorder %s2131_s15, %s2621_s4 }
 0xba2   : > { %p2133_p12 = pnand %p2132_p11, %p2364_p3 }
 0xba3   : > { %p2138_p2 = por %p2137_p1, %p2136_p0 }
 0xba4   : > { %p2134_p13 = pneg %p2133_p12 }
 0xba5   : > { %p2140_p5 = por %p2139_p4, %p2138_p2 }
 0xba7   : > { %p2141_p6 = pnand %p2140_p5, %p2134_p13 }
 0xba9   : > { %2144 = shalt.err (!%p2141_p6)
}
 0xbaa   : > { %1996 = dma.vmem_to_hbm [thread:$0]  (%p2364_p3), %s1633_s6, 16, %s2621_s4, %s1620_s21  }
 0xbab PF: > { %s2753_s0 = sld [smem:[#allocation13_spill]]  ;;  %s2754_s16 = sld [smem:[#allocation7_spill]] }
 0xbb1   : > { %p2002_p7 = scmp.ge.s32.totalorder %s2753_s0, 2  ;;  %s1644_s18 = sand.u32 1, %s2754_s16  }
 0xbb2   : > { %s1645_s9 = scalar_lea.sflag [#allocation5], %s1644_s18 }
 0xbb3   : > { %p1999_p8 = pnand %p2002_p7, %p2374_p9 }
 0xbb5   : > { %2178 = dma.done.wait (!%p1999_p8), %s1645_s9, 16  }
 0xbb6   : > { %2180 = vsyncadd (!%p1999_p8), %s1645_s9, 4294967280  ;;  %s29_s28 = sadd.s32 1, %s2753_s0   ;;  %s2756_s1 = sld [smem:[#allocation8_spill]] }
 0xbb7   : > { %p26_p10 = scmp.ge.s32.totalorder %s29_s28, 6   ;;  %s2757_s23 = sld [smem:[#allocation18_spill]] }
 0xbb8   : > { %s2758_s24 = sld [smem:[#allocation11_spill]]  ;;  %s2759_s25 = sld [smem:[#allocation12_spill]] }
 0xbb9   : > { %s2760_s26 = sld [smem:[#allocation14_spill]]  ;;  %s2761_s27 = sld [smem:[#allocation16_spill]] }
 0xbba   : > { %s2762_s21 = smov %s2187_s22  ;;  %28 = sbr.rel (!%p26_p10) target bundleno = 17 (0x11), region = 166 }
 0xbbc   : > { %s2763_s22 = smov %s2756_s1 }
 0xbc1   :  { %1649 = vsyncpa [#allocation5], 1 }
 0xbc2   :  { %1651 = vsyncpa [#allocation5 + $0x1], 1 }

</bundles_post_ra>
